<compile_context>
chip_gen: v7x
topology: tpu7x:2x2x1
jax: 0.10.0
libtpu: 0.0.40
codegen_flags: <defaults>
</compile_context>

<pallas_src>
import functools

import jax
import jax.numpy as jnp
from jax.experimental import pallas as pl
from jax.experimental.pallas import tpu as pltpu


def _round_up(x, m):
    return ((x + m - 1) // m) * m


# ----------------------------------------------------------------------------
# Tiled matmul:  (M, K) @ (K, N) -> (M, N)    (nn.Linear(bias=False) uses x @ W.T)
# ----------------------------------------------------------------------------
def _matmul_kernel(x_ref, w_ref, o_ref, acc_ref):
    @pl.when(pl.program_id(2) == 0)
    def _():
        acc_ref[...] = jnp.zeros_like(acc_ref)

    acc_ref[...] += jnp.dot(x_ref[...], w_ref[...],
                            preferred_element_type=jnp.float32)

    @pl.when(pl.program_id(2) == pl.num_programs(2) - 1)
    def _():
        o_ref[...] = acc_ref[...].astype(o_ref.dtype)


def pallas_matmul(x, w, *, tm_max=128, tn_max=128, tk_max=256):
    """x: (M, K), w: (K, N) -> (M, N). Pads to MXU/vreg-friendly tiles."""
    M, K = x.shape
    K2, N = w.shape
    assert K == K2
    tm = min(tm_max, _round_up(M, 8))
    tn = min(tn_max, _round_up(N, 128))
    tk = min(tk_max, _round_up(K, 128))
    Mp, Kp, Np = _round_up(M, tm), _round_up(K, tk), _round_up(N, tn)
    xp = jnp.pad(x, ((0, Mp - M), (0, Kp - K))) if (Mp, Kp) != (M, K) else x
    wp = jnp.pad(w, ((0, Kp - K), (0, Np - N))) if (Kp, Np) != (K, N) else w

    out = pl.pallas_call(
        _matmul_kernel,
        out_shape=jax.ShapeDtypeStruct((Mp, Np), x.dtype),
        grid_spec=pltpu.PrefetchScalarGridSpec(
            num_scalar_prefetch=0,
            grid=(Mp // tm, Np // tn, Kp // tk),
            in_specs=[
                pl.BlockSpec((tm, tk), lambda i, j, k: (i, k)),
                pl.BlockSpec((tk, tn), lambda i, j, k: (k, j)),
            ],
            out_specs=pl.BlockSpec((tm, tn), lambda i, j, k: (i, j)),
            scratch_shapes=[pltpu.VMEM((tm, tn), jnp.float32)],
        ),
        compiler_params=pltpu.CompilerParams(
            dimension_semantics=("parallel", "parallel", "arbitrary"),
            vmem_limit_bytes=32 * 1024 * 1024,
        ),
    )(xp, wp)
    return out[:M, :N]


# ----------------------------------------------------------------------------
# Fused multi-head additive attention (all heads per grid step, flash-style kv tiling)
# ----------------------------------------------------------------------------
def _additive_mha_kernel(q_ref, kt_ref, v_ref, w_ref, o_ref,
                         m_ref, l_ref, acc_ref,
                         *, num_heads, head_dim, nk_actual, tq, tk, mask_keys):
    kvi = pl.program_id(2)

    @pl.when(kvi == 0)
    def _():
        m_ref[...] = jnp.full_like(m_ref, -1e30)
        l_ref[...] = jnp.zeros_like(l_ref)
        acc_ref[...] = jnp.zeros_like(acc_ref)

    q = q_ref[0]      # (tq, H)  queries, heads merged along lanes
    kt = kt_ref[0]    # (H, tk)  keys pre-transposed -> each feature row is lane-contiguous
    v = v_ref[0]      # (tk, H)

    if mask_keys:
        lane = jax.lax.broadcasted_iota(jnp.int32, (tq, tk), 1)
        key_mask = (lane + kvi * tk) < nk_actual
    else:
        key_mask = None

    for h in range(num_heads):                       # unrolled: num_heads is static
        base = h * head_dim
        # ---- additive scores: lane-dense 2-D accumulation (no rank-3 intermediate) ----
        s = jnp.zeros((tq, tk), jnp.float32)
        for dd in range(head_dim):                   # unrolled: head_dim is static
            col = base + dd
            s = s + w_ref[dd] * jnp.tanh(q[:, col:col + 1] + kt[col:col + 1, :])
        if key_mask is not None:
            s = jnp.where(key_mask, s, -1e30)

        # ---- online softmax update with deferred normalization ----
        m_old = m_ref[h]                             # (tq, 1)
        m_new = jnp.maximum(m_old, jnp.max(s, axis=-1, keepdims=True))
        alpha = jnp.exp(m_old - m_new)               # (tq, 1)
        p = jnp.exp(s - m_new)                       # (tq, tk)  unnormalized
        l_ref[h] = alpha * l_ref[h] + jnp.sum(p, axis=-1, keepdims=True)
        v_h = v[:, base:base + head_dim]             # (tk, d)
        acc_ref[h] = alpha * acc_ref[h] + jnp.dot(
            p.astype(v_h.dtype), v_h, preferred_element_type=jnp.float32)
        m_ref[h] = m_new

    @pl.when(kvi == pl.num_programs(2) - 1)
    def _():
        # One reciprocal per head/row at finalize, then a single lane-dense (tq, H) store.
        outs = [acc_ref[h] * (1.0 / l_ref[h]) for h in range(num_heads)]
        o_ref[0] = jnp.concatenate(outs, axis=-1).astype(o_ref.dtype)


def pallas_additive_mha(q, k, v, w_attn, num_heads, *, tq_max=128, tk_max=128):
    """q: (B, Nq, H), k/v: (B, Nk, H), w_attn: (head_dim,) -> (B, Nq, H)."""
    B, Nq, H = q.shape
    _, Nk, _ = k.shape
    head_dim = H // num_heads

    tq = min(tq_max, _round_up(Nq, 8))
    tk = min(tk_max, _round_up(Nk, 128))
    Nq_p = _round_up(Nq, tq)
    Nk_p = _round_up(Nk, tk)

    q_p = jnp.pad(q, ((0, 0), (0, Nq_p - Nq), (0, 0))) if Nq_p != Nq else q
    k_p = jnp.pad(k, ((0, 0), (0, Nk_p - Nk), (0, 0))) if Nk_p != Nk else k
    v_p = jnp.pad(v, ((0, 0), (0, Nk_p - Nk), (0, 0))) if Nk_p != Nk else v
    kT = jnp.swapaxes(k_p, 1, 2)                     # (B, H, Nk_p)

    grid = (B, Nq_p // tq, Nk_p // tk)
    kernel = functools.partial(
        _additive_mha_kernel, num_heads=num_heads, head_dim=head_dim,
        nk_actual=Nk, tq=tq, tk=tk, mask_keys=(Nk_p != Nk))

    flops = 4 * B * Nq_p * Nk_p * H
    transcendentals = B * Nq_p * Nk_p * (H + num_heads)  # tanh per feature + exp per head
    bytes_accessed = 4 * (q_p.size + kT.size + v_p.size + B * Nq_p * H + w_attn.size)

    out = pl.pallas_call(
        kernel,
        out_shape=jax.ShapeDtypeStruct((B, Nq_p, H), q.dtype),
        grid_spec=pltpu.PrefetchScalarGridSpec(
            num_scalar_prefetch=0,
            grid=grid,
            in_specs=[
                pl.BlockSpec((1, tq, H), lambda b, qi, ki: (b, qi, 0)),
                pl.BlockSpec((1, H, tk), lambda b, qi, ki: (b, 0, ki)),
                pl.BlockSpec((1, tk, H), lambda b, qi, ki: (b, ki, 0)),
                pl.BlockSpec(memory_space=pltpu.MemorySpace.SMEM),
            ],
            out_specs=pl.BlockSpec((1, tq, H), lambda b, qi, ki: (b, qi, 0)),
            scratch_shapes=[
                pltpu.VMEM((num_heads, tq, 1), jnp.float32),         # running max
                pltpu.VMEM((num_heads, tq, 1), jnp.float32),         # running sum
                pltpu.VMEM((num_heads, tq, head_dim), jnp.float32),  # unnormalized acc
            ],
        ),
        compiler_params=pltpu.CompilerParams(
            dimension_semantics=("parallel", "parallel", "arbitrary"),
            vmem_limit_bytes=32 * 1024 * 1024,
        ),
        cost_estimate=pl.CostEstimate(
            flops=flops, transcendentals=transcendentals,
            bytes_accessed=bytes_accessed),
    )(q_p, kT, v_p, w_attn)
    return out[:, :Nq, :]


# ----------------------------------------------------------------------------
# MultiHeadAttention forward
# ----------------------------------------------------------------------------
@functools.partial(jax.jit, static_argnames=("num_heads",))
def multi_head_attention(queries, keys, values, params, num_heads):
    """queries: (B, Nq, query_size), keys/values: (B, Nk, key/value_size)."""
    Wq, Wk, Wv, Wo, w_attn = (params["W_q"], params["W_k"], params["W_v"],
                              params["W_o"], params["w_attn"])
    B, Nq, _ = queries.shape
    H = Wq.shape[0]

    def project(x, W):   # nn.Linear(bias=False): x @ W.T
        Bx, N, F = x.shape
        return pallas_matmul(x.reshape(Bx * N, F), W.T).reshape(Bx, N, H)

    # TODO(synk): for self-attention (queries is keys is values) the three projections could
    # be fused into one GEMM with a concatenated (F, 3H) weight; the module contract allows
    # distinct q/k/v inputs, so they are kept as separate tiled matmuls here.
    q = project(queries, Wq)          # (B, Nq, H)
    k = project(keys, Wk)             # (B, Nk, H)
    v = project(values, Wv)           # (B, Nk, H)

    attn = pallas_additive_mha(q, k, v, w_attn.reshape(-1), num_heads)  # (B, Nq, H)

    out = pallas_matmul(attn.reshape(B * Nq, H), Wo.T)                  # W_o projection
    return out.reshape(B, Nq, H)


# ----------------------------------------------------------------------------
# Pure-JAX reference (mirrors the PyTorch module) for the correctness check
# ----------------------------------------------------------------------------
def _transpose_qkv(X, num_heads):
    B, N, H = X.shape
    X = X.reshape(B, N, num_heads, H // num_heads)
    X = jnp.transpose(X, (0, 2, 1, 3))
    return X.reshape(B * num_heads, N, H // num_heads)


def _transpose_output(X, num_heads):
    BH, N, d = X.shape
    X = X.reshape(BH // num_heads, num_heads, N, d)
    X = jnp.transpose(X, (0, 2, 1, 3))
    return X.reshape(X.shape[0], N, num_heads * d)


def reference_mha(queries, keys, values, params, num_heads):
    Wq, Wk, Wv, Wo, w_attn = (params["W_q"], params["W_k"], params["W_v"],
                              params["W_o"], params["w_attn"])
    q = _transpose_qkv(queries @ Wq.T, num_heads)
    k = _transpose_qkv(keys @ Wk.T, num_heads)
    v = _transpose_qkv(values @ Wv.T, num_heads)
    y = jnp.tanh(q[:, :, None, :] + k[:, None, :, :])          # (BH, Nq, Nk, d)
    scores = jnp.einsum("bqkd,d->bqk", y, w_attn[0])
    p = jax.nn.softmax(scores, axis=-1)
    out = jnp.einsum("bqk,bkd->bqd", p, v)
    out = _transpose_output(out, num_heads)
    return out @ Wo.T


if __name__ == "__main__":
    # Small shapes consistent with the module.
    B, Nq, Nk = 2, 8, 8
    query_size = key_size = value_size = 16
    hidden_size, num_heads = 32, 4
    head_dim = hidden_size // num_heads

    key = jax.random.PRNGKey(0)
    ks = jax.random.split(key, 8)
    scale = 0.1
    params = {
        "W_q": scale * jax.random.normal(ks[0], (hidden_size, query_size), jnp.float32),
        "W_k": scale * jax.random.normal(ks[1], (hidden_size, key_size), jnp.float32),
        "W_v": scale * jax.random.normal(ks[2], (hidden_size, value_size), jnp.float32),
        "W_o": scale * jax.random.normal(ks[3], (hidden_size, hidden_size), jnp.float32),
        "w_attn": scale * jax.random.normal(ks[4], (1, head_dim), jnp.float32),
    }
    queries = jax.random.normal(ks[5], (B, Nq, query_size), jnp.float32)
    keys_in = jax.random.normal(ks[6], (B, Nk, key_size), jnp.float32)
    values_in = jax.random.normal(ks[7], (B, Nk, value_size), jnp.float32)

    out = multi_head_attention(queries, keys_in, values_in, params, num_heads)
    out = jax.block_until_ready(out)

    ref = reference_mha(queries, keys_in, values_in, params, num_heads)
    assert out.shape == (B, Nq, hidden_size)
    assert jnp.allclose(out, ref, atol=1e-5, rtol=1e-5), "Pallas output mismatch vs reference"

    print("KERNEL_OK")
</pallas_src>

<mosaic_0001>
module attributes {stable_mosaic.version = 11 : i64} {
  func.func @_matmul_kernel(%arg0: i32, %arg1: i32, %arg2: i32, %arg3: memref<16x128xf32, #tpu.memory_space<vmem>>, %arg4: memref<128x128xf32, #tpu.memory_space<vmem>>, %arg5: memref<16x128xf32, #tpu.memory_space<vmem>>, %arg6: memref<16x128xf32, #tpu.memory_space<vmem>>) attributes {dimension_semantics = [#tpu.dimension_semantics<parallel>, #tpu.dimension_semantics<parallel>, #tpu.dimension_semantics<arbitrary>], iteration_bounds = array<i64: 1, 1, 1>, scalar_prefetch = 0 : i64, scratch_operands = 1 : i64, tpu.core_type = #tpu.core_type<tc>, window_params = [{transform_indices = @transform_0, window_bounds = array<i64: 16, 128>}, {transform_indices = @transform_1, window_bounds = array<i64: 128, 128>}, {transform_indices = @transform_2, window_bounds = array<i64: 16, 128>}]} {
    %c0_i32 = arith.constant 0 : i32
    %0 = arith.cmpi eq, %arg2, %c0_i32 : i32
    %1 = arith.extui %0 : i1 to i32
    %c0_i32_0 = arith.constant 0 : i32
    %2 = arith.cmpi ne, %1, %c0_i32_0 : i32
    scf.if %2 {
      %cst_10 = arith.constant 0.000000e+00 : f32
      %12 = vector.broadcast %cst_10 : f32 to vector<16x128xf32>
      %c0_11 = arith.constant 0 : index
      %c0_12 = arith.constant 0 : index
      %13 = vector.load %arg6[%c0_11, %c0_12] : memref<16x128xf32, #tpu.memory_space<vmem>>, vector<16x128xf32>
      tpu.vector_store %arg6[%c0_11, %c0_12], %12 {strides = array<i32>} : memref<16x128xf32, #tpu.memory_space<vmem>>, vector<16x128xf32>,
    } else {
    }
    %c0 = arith.constant 0 : index
    %c0_1 = arith.constant 0 : index
    %3 = vector.load %arg6[%c0, %c0_1] : memref<16x128xf32, #tpu.memory_space<vmem>>, vector<16x128xf32>
    %c0_2 = arith.constant 0 : index
    %c0_3 = arith.constant 0 : index
    %4 = vector.load %arg3[%c0_2, %c0_3] : memref<16x128xf32, #tpu.memory_space<vmem>>, vector<16x128xf32>
    %c0_4 = arith.constant 0 : index
    %c0_5 = arith.constant 0 : index
    %5 = vector.load %arg4[%c0_4, %c0_5] : memref<128x128xf32, #tpu.memory_space<vmem>>, vector<128x128xf32>
    %cst = arith.constant dense<0.000000e+00> : vector<16x128xf32>
    %6 = tpu.matmul %4, %5, %cst {dimension_numbers = #tpu.dot_dimension_numbers<[1], [0], [0], [1], [0, 0, 1, 1], [], []>} : vector<16x128xf32>, vector<128x128xf32>, vector<16x128xf32> -> vector<16x128xf32>
    %7 = arith.addf %3, %6 : vector<16x128xf32>
    %c0_6 = arith.constant 0 : index
    %c0_7 = arith.constant 0 : index
    %8 = vector.load %arg6[%c0_6, %c0_7] : memref<16x128xf32, #tpu.memory_space<vmem>>, vector<16x128xf32>
    tpu.vector_store %arg6[%c0_6, %c0_7], %7 {strides = array<i32>} : memref<16x128xf32, #tpu.memory_space<vmem>>, vector<16x128xf32>,
    %c0_i32_8 = arith.constant 0 : i32
    %9 = arith.cmpi eq, %arg2, %c0_i32_8 : i32
    %10 = arith.extui %9 : i1 to i32
    %c0_i32_9 = arith.constant 0 : i32
    %11 = arith.cmpi ne, %10, %c0_i32_9 : i32
    scf.if %11 {
      %c0_10 = arith.constant 0 : index
      %c0_11 = arith.constant 0 : index
      %12 = vector.load %arg6[%c0_10, %c0_11] : memref<16x128xf32, #tpu.memory_space<vmem>>, vector<16x128xf32>
      %c0_12 = arith.constant 0 : index
      %c0_13 = arith.constant 0 : index
      %13 = vector.load %arg5[%c0_12, %c0_13] : memref<16x128xf32, #tpu.memory_space<vmem>>, vector<16x128xf32>
      tpu.vector_store %arg5[%c0_12, %c0_13], %12 {strides = array<i32>} : memref<16x128xf32, #tpu.memory_space<vmem>>, vector<16x128xf32>,
    } else {
    }
    return
  }
  func.func @transform_0(%arg0: i32, %arg1: i32, %arg2: i32) -> (i32, i32) {
    %c0_i32 = arith.constant 0 : i32
    return %arg0, %arg2 : i32, i32
  }
  func.func @transform_1(%arg0: i32, %arg1: i32, %arg2: i32) -> (i32, i32) {
    %c0_i32 = arith.constant 0 : i32
    return %arg2, %arg1 : i32, i32
  }
  func.func @transform_2(%arg0: i32, %arg1: i32, %arg2: i32) -> (i32, i32) {
    %c0_i32 = arith.constant 0 : i32
    return %arg0, %arg1 : i32, i32
  }
}

module attributes {stable_mosaic.version = 11 : i64} {
  func.func @_additive_mha_kernel(%arg0: i32, %arg1: i32, %arg2: i32, %arg3: memref<1x8x32xf32, #tpu.memory_space<vmem>>, %arg4: memref<1x32x128xf32, #tpu.memory_space<vmem>>, %arg5: memref<1x128x32xf32, #tpu.memory_space<vmem>>, %arg6: memref<8xf32, #tpu.memory_space<smem>>, %arg7: memref<1x8x32xf32, #tpu.memory_space<vmem>>, %arg8: memref<4x8x1xf32, #tpu.memory_space<vmem>>, %arg9: memref<4x8x1xf32, #tpu.memory_space<vmem>>, %arg10: memref<4x8x8xf32, #tpu.memory_space<vmem>>) attributes {dimension_semantics = [#tpu.dimension_semantics<parallel>, #tpu.dimension_semantics<parallel>, #tpu.dimension_semantics<arbitrary>], iteration_bounds = array<i64: 2, 1, 1>, scalar_prefetch = 0 : i64, scratch_operands = 3 : i64, tpu.core_type = #tpu.core_type<tc>, window_params = [{transform_indices = @transform_0, window_bounds = array<i64: 1, 8, 32>}, {transform_indices = @transform_1, window_bounds = array<i64: 1, 32, 128>}, {transform_indices = @transform_2, window_bounds = array<i64: 1, 128, 32>}, {transform_indices = @transform_3, window_bounds = array<i64: 8>}, {transform_indices = @transform_4, window_bounds = array<i64: 1, 8, 32>}]} {
    %c0_i32 = arith.constant 0 : i32
    %0 = arith.cmpi eq, %arg2, %c0_i32 : i32
    %1 = arith.extui %0 : i1 to i32
    %c0_i32_0 = arith.constant 0 : i32
    %2 = arith.cmpi ne, %1, %c0_i32_0 : i32
    scf.if %2 {
      %cst_127 = arith.constant -1.000000e+30 : f32
      %478 = vector.broadcast %cst_127 : f32 to vector<4x8x1xf32>
      %c0_128 = arith.constant 0 : index
      %c0_129 = arith.constant 0 : index
      %c0_130 = arith.constant 0 : index
      %479 = vector.load %arg8[%c0_128, %c0_129, %c0_130] : memref<4x8x1xf32, #tpu.memory_space<vmem>>, vector<4x8x1xf32>
      tpu.vector_store %arg8[%c0_128, %c0_129, %c0_130], %478 {strides = array<i32>} : memref<4x8x1xf32, #tpu.memory_space<vmem>>, vector<4x8x1xf32>,
      %cst_131 = arith.constant 0.000000e+00 : f32
      %480 = vector.broadcast %cst_131 : f32 to vector<4x8x1xf32>
      %c0_132 = arith.constant 0 : index
      %c0_133 = arith.constant 0 : index
      %c0_134 = arith.constant 0 : index
      %481 = vector.load %arg9[%c0_132, %c0_133, %c0_134] : memref<4x8x1xf32, #tpu.memory_space<vmem>>, vector<4x8x1xf32>
      tpu.vector_store %arg9[%c0_132, %c0_133, %c0_134], %480 {strides = array<i32>} : memref<4x8x1xf32, #tpu.memory_space<vmem>>, vector<4x8x1xf32>,
      %cst_135 = arith.constant 0.000000e+00 : f32
      %482 = vector.broadcast %cst_135 : f32 to vector<4x8x8xf32>
      %c0_136 = arith.constant 0 : index
      %c0_137 = arith.constant 0 : index
      %c0_138 = arith.constant 0 : index
      %483 = vector.load %arg10[%c0_136, %c0_137, %c0_138] : memref<4x8x8xf32, #tpu.memory_space<vmem>>, vector<4x8x8xf32>
      tpu.vector_store %arg10[%c0_136, %c0_137, %c0_138], %482 {strides = array<i32>} : memref<4x8x8xf32, #tpu.memory_space<vmem>>, vector<4x8x8xf32>,
    } else {
    }
    %c0 = arith.constant 0 : index
    %c0_1 = arith.constant 0 : index
    %c0_2 = arith.constant 0 : index
    %3 = vector.load %arg3[%c0, %c0_1, %c0_2] : memref<1x8x32xf32, #tpu.memory_space<vmem>>, vector<1x8x32xf32>
    %4 = vector.shape_cast %3 : vector<1x8x32xf32> to vector<8x32xf32>
    %c0_3 = arith.constant 0 : index
    %c0_4 = arith.constant 0 : index
    %c0_5 = arith.constant 0 : index
    %5 = vector.load %arg4[%c0_3, %c0_4, %c0_5] : memref<1x32x128xf32, #tpu.memory_space<vmem>>, vector<1x32x128xf32>
    %6 = vector.shape_cast %5 : vector<1x32x128xf32> to vector<32x128xf32>
    %c0_6 = arith.constant 0 : index
    %c0_7 = arith.constant 0 : index
    %c0_8 = arith.constant 0 : index
    %7 = vector.load %arg5[%c0_6, %c0_7, %c0_8] : memref<1x128x32xf32, #tpu.memory_space<vmem>>, vector<1x128x32xf32>
    %8 = vector.shape_cast %7 : vector<1x128x32xf32> to vector<128x32xf32>
    %9 = tpu.iota {dimensions = array<i32: 1>} : vector<8x128xi32>
    %c128_i32 = arith.constant 128 : i32
    %10 = arith.muli %arg2, %c128_i32 : i32
    %11 = vector.broadcast %10 : i32 to vector<8x128xi32>
    %12 = arith.addi %9, %11 : vector<8x128xi32>
    %c8_i32 = arith.constant 8 : i32
    %13 = vector.broadcast %c8_i32 : i32 to vector<8x128xi32>
    %14 = arith.cmpi slt, %12, %13 : vector<8x128xi32>
    %cst = arith.constant 0.000000e+00 : f32
    %15 = vector.broadcast %cst : f32 to vector<8x128xf32>
    %c0_9 = arith.constant 0 : index
    %16 = memref.load %arg6[%c0_9] : memref<8xf32, #tpu.memory_space<smem>>
    %17 = vector.extract_strided_slice %4 {offsets = [0, 0], sizes = [8, 1], strides = [1, 1]} : vector<8x32xf32> to vector<8x1xf32>
    %18 = vector.extract_strided_slice %6 {offsets = [0, 0], sizes = [1, 128], strides = [1, 1]} : vector<32x128xf32> to vector<1x128xf32>
    %19 = vector.broadcast %17 : vector<8x1xf32> to vector<8x128xf32>
    %20 = vector.broadcast %18 : vector<1x128xf32> to vector<8x128xf32>
    %21 = arith.addf %19, %20 : vector<8x128xf32>
    %22 = math.tanh %21 : vector<8x128xf32>
    %23 = vector.broadcast %16 : f32 to vector<8x128xf32>
    %24 = arith.mulf %23, %22 : vector<8x128xf32>
    %25 = arith.addf %15, %24 : vector<8x128xf32>
    %c1 = arith.constant 1 : index
    %26 = memref.load %arg6[%c1] : memref<8xf32, #tpu.memory_space<smem>>
    %27 = vector.extract_strided_slice %4 {offsets = [0, 1], sizes = [8, 1], strides = [1, 1]} : vector<8x32xf32> to vector<8x1xf32>
    %28 = vector.extract_strided_slice %6 {offsets = [1, 0], sizes = [1, 128], strides = [1, 1]} : vector<32x128xf32> to vector<1x128xf32>
    %29 = vector.broadcast %27 : vector<8x1xf32> to vector<8x128xf32>
    %30 = vector.broadcast %28 : vector<1x128xf32> to vector<8x128xf32>
    %31 = arith.addf %29, %30 : vector<8x128xf32>
    %32 = math.tanh %31 : vector<8x128xf32>
    %33 = vector.broadcast %26 : f32 to vector<8x128xf32>
    %34 = arith.mulf %33, %32 : vector<8x128xf32>
    %35 = arith.addf %25, %34 : vector<8x128xf32>
    %c2 = arith.constant 2 : index
    %36 = memref.load %arg6[%c2] : memref<8xf32, #tpu.memory_space<smem>>
    %37 = vector.extract_strided_slice %4 {offsets = [0, 2], sizes = [8, 1], strides = [1, 1]} : vector<8x32xf32> to vector<8x1xf32>
    %38 = vector.extract_strided_slice %6 {offsets = [2, 0], sizes = [1, 128], strides = [1, 1]} : vector<32x128xf32> to vector<1x128xf32>
    %39 = vector.broadcast %37 : vector<8x1xf32> to vector<8x128xf32>
    %40 = vector.broadcast %38 : vector<1x128xf32> to vector<8x128xf32>
    %41 = arith.addf %39, %40 : vector<8x128xf32>
    %42 = math.tanh %41 : vector<8x128xf32>
    %43 = vector.broadcast %36 : f32 to vector<8x128xf32>
    %44 = arith.mulf %43, %42 : vector<8x128xf32>
    %45 = arith.addf %35, %44 : vector<8x128xf32>
    %c3 = arith.constant 3 : index
    %46 = memref.load %arg6[%c3] : memref<8xf32, #tpu.memory_space<smem>>
    %47 = vector.extract_strided_slice %4 {offsets = [0, 3], sizes = [8, 1], strides = [1, 1]} : vector<8x32xf32> to vector<8x1xf32>
    %48 = vector.extract_strided_slice %6 {offsets = [3, 0], sizes = [1, 128], strides = [1, 1]} : vector<32x128xf32> to vector<1x128xf32>
    %49 = vector.broadcast %47 : vector<8x1xf32> to vector<8x128xf32>
    %50 = vector.broadcast %48 : vector<1x128xf32> to vector<8x128xf32>
    %51 = arith.addf %49, %50 : vector<8x128xf32>
    %52 = math.tanh %51 : vector<8x128xf32>
    %53 = vector.broadcast %46 : f32 to vector<8x128xf32>
    %54 = arith.mulf %53, %52 : vector<8x128xf32>
    %55 = arith.addf %45, %54 : vector<8x128xf32>
    %c4 = arith.constant 4 : index
    %56 = memref.load %arg6[%c4] : memref<8xf32, #tpu.memory_space<smem>>
    %57 = vector.extract_strided_slice %4 {offsets = [0, 4], sizes = [8, 1], strides = [1, 1]} : vector<8x32xf32> to vector<8x1xf32>
    %58 = vector.extract_strided_slice %6 {offsets = [4, 0], sizes = [1, 128], strides = [1, 1]} : vector<32x128xf32> to vector<1x128xf32>
    %59 = vector.broadcast %57 : vector<8x1xf32> to vector<8x128xf32>
    %60 = vector.broadcast %58 : vector<1x128xf32> to vector<8x128xf32>
    %61 = arith.addf %59, %60 : vector<8x128xf32>
    %62 = math.tanh %61 : vector<8x128xf32>
    %63 = vector.broadcast %56 : f32 to vector<8x128xf32>
    %64 = arith.mulf %63, %62 : vector<8x128xf32>
    %65 = arith.addf %55, %64 : vector<8x128xf32>
    %c5 = arith.constant 5 : index
    %66 = memref.load %arg6[%c5] : memref<8xf32, #tpu.memory_space<smem>>
    %67 = vector.extract_strided_slice %4 {offsets = [0, 5], sizes = [8, 1], strides = [1, 1]} : vector<8x32xf32> to vector<8x1xf32>
    %68 = vector.extract_strided_slice %6 {offsets = [5, 0], sizes = [1, 128], strides = [1, 1]} : vector<32x128xf32> to vector<1x128xf32>
    %69 = vector.broadcast %67 : vector<8x1xf32> to vector<8x128xf32>
    %70 = vector.broadcast %68 : vector<1x128xf32> to vector<8x128xf32>
    %71 = arith.addf %69, %70 : vector<8x128xf32>
    %72 = math.tanh %71 : vector<8x128xf32>
    %73 = vector.broadcast %66 : f32 to vector<8x128xf32>
    %74 = arith.mulf %73, %72 : vector<8x128xf32>
    %75 = arith.addf %65, %74 : vector<8x128xf32>
    %c6 = arith.constant 6 : index
    %76 = memref.load %arg6[%c6] : memref<8xf32, #tpu.memory_space<smem>>
    %77 = vector.extract_strided_slice %4 {offsets = [0, 6], sizes = [8, 1], strides = [1, 1]} : vector<8x32xf32> to vector<8x1xf32>
    %78 = vector.extract_strided_slice %6 {offsets = [6, 0], sizes = [1, 128], strides = [1, 1]} : vector<32x128xf32> to vector<1x128xf32>
    %79 = vector.broadcast %77 : vector<8x1xf32> to vector<8x128xf32>
    %80 = vector.broadcast %78 : vector<1x128xf32> to vector<8x128xf32>
    %81 = arith.addf %79, %80 : vector<8x128xf32>
    %82 = math.tanh %81 : vector<8x128xf32>
    %83 = vector.broadcast %76 : f32 to vector<8x128xf32>
    %84 = arith.mulf %83, %82 : vector<8x128xf32>
    %85 = arith.addf %75, %84 : vector<8x128xf32>
    %c7 = arith.constant 7 : index
    %86 = memref.load %arg6[%c7] : memref<8xf32, #tpu.memory_space<smem>>
    %87 = vector.extract_strided_slice %4 {offsets = [0, 7], sizes = [8, 1], strides = [1, 1]} : vector<8x32xf32> to vector<8x1xf32>
    %88 = vector.extract_strided_slice %6 {offsets = [7, 0], sizes = [1, 128], strides = [1, 1]} : vector<32x128xf32> to vector<1x128xf32>
    %89 = vector.broadcast %87 : vector<8x1xf32> to vector<8x128xf32>
    %90 = vector.broadcast %88 : vector<1x128xf32> to vector<8x128xf32>
    %91 = arith.addf %89, %90 : vector<8x128xf32>
    %92 = math.tanh %91 : vector<8x128xf32>
    %93 = vector.broadcast %86 : f32 to vector<8x128xf32>
    %94 = arith.mulf %93, %92 : vector<8x128xf32>
    %95 = arith.addf %85, %94 : vector<8x128xf32>
    %cst_10 = arith.constant -1.000000e+30 : f32
    %96 = vector.broadcast %cst_10 : f32 to vector<8x128xf32>
    %97 = arith.select %14, %95, %96 : vector<8x128xi1>, vector<8x128xf32>
    %c0_11 = arith.constant 0 : index
    %c0_12 = arith.constant 0 : index
    %c0_13 = arith.constant 0 : index
    %98 = vector.load %arg8[%c0_11, %c0_12, %c0_13] : memref<4x8x1xf32, #tpu.memory_space<vmem>>, vector<1x8x1xf32>
    %99 = vector.shape_cast %98 : vector<1x8x1xf32> to vector<8x1xf32>
    %cst_14 = arith.constant dense<0xFF800000> : vector<8xf32>
    %100 = vector.multi_reduction <maximumf>, %97, %cst_14 [1] : vector<8x128xf32> to vector<8xf32>
    %101 = vector.shape_cast %100 : vector<8xf32> to vector<8x1xf32>
    %102 = arith.maximumf %99, %101 : vector<8x1xf32>
    %103 = arith.subf %99, %102 : vector<8x1xf32>
    %104 = math.exp %103 : vector<8x1xf32>
    %105 = vector.broadcast %102 : vector<8x1xf32> to vector<8x128xf32>
    %106 = arith.subf %97, %105 : vector<8x128xf32>
    %107 = math.exp %106 : vector<8x128xf32>
    %c0_15 = arith.constant 0 : index
    %c0_16 = arith.constant 0 : index
    %c0_17 = arith.constant 0 : index
    %108 = vector.load %arg9[%c0_15, %c0_16, %c0_17] : memref<4x8x1xf32, #tpu.memory_space<vmem>>, vector<1x8x1xf32>
    %109 = vector.shape_cast %108 : vector<1x8x1xf32> to vector<8x1xf32>
    %110 = arith.mulf %104, %109 : vector<8x1xf32>
    %cst_18 = arith.constant dense<0.000000e+00> : vector<8xf32>
    %111 = vector.multi_reduction <add>, %107, %cst_18 [1] : vector<8x128xf32> to vector<8xf32>
    %112 = vector.shape_cast %111 : vector<8xf32> to vector<8x1xf32>
    %113 = arith.addf %110, %112 : vector<8x1xf32>
    %c0_19 = arith.constant 0 : index
    %c0_20 = arith.constant 0 : index
    %c0_21 = arith.constant 0 : index
    %114 = vector.load %arg9[%c0_19, %c0_20, %c0_21] : memref<4x8x1xf32, #tpu.memory_space<vmem>>, vector<1x8x1xf32>
    %115 = vector.shape_cast %114 : vector<1x8x1xf32> to vector<8x1xf32>
    %116 = vector.shape_cast %113 : vector<8x1xf32> to vector<1x8x1xf32>
    tpu.vector_store %arg9[%c0_19, %c0_20, %c0_21], %116 {strides = array<i32>} : memref<4x8x1xf32, #tpu.memory_space<vmem>>, vector<1x8x1xf32>,
    %117 = vector.extract_strided_slice %8 {offsets = [0, 0], sizes = [128, 8], strides = [1, 1]} : vector<128x32xf32> to vector<128x8xf32>
    %c0_22 = arith.constant 0 : index
    %c0_23 = arith.constant 0 : index
    %c0_24 = arith.constant 0 : index
    %118 = vector.load %arg10[%c0_22, %c0_23, %c0_24] : memref<4x8x8xf32, #tpu.memory_space<vmem>>, vector<1x8x8xf32>
    %119 = vector.shape_cast %118 : vector<1x8x8xf32> to vector<8x8xf32>
    %120 = vector.broadcast %104 : vector<8x1xf32> to vector<8x8xf32>
    %121 = arith.mulf %120, %119 : vector<8x8xf32>
    %cst_25 = arith.constant dense<0.000000e+00> : vector<8x8xf32>
    %122 = tpu.matmul %107, %117, %cst_25 {dimension_numbers = #tpu.dot_dimension_numbers<[1], [0], [0], [1], [0, 0, 1, 1], [], []>} : vector<8x128xf32>, vector<128x8xf32>, vector<8x8xf32> -> vector<8x8xf32>
    %123 = arith.addf %121, %122 : vector<8x8xf32>
    %c0_26 = arith.constant 0 : index
    %c0_27 = arith.constant 0 : index
    %c0_28 = arith.constant 0 : index
    %124 = vector.load %arg10[%c0_26, %c0_27, %c0_28] : memref<4x8x8xf32, #tpu.memory_space<vmem>>, vector<1x8x8xf32>
    %125 = vector.shape_cast %124 : vector<1x8x8xf32> to vector<8x8xf32>
    %126 = vector.shape_cast %123 : vector<8x8xf32> to vector<1x8x8xf32>
    tpu.vector_store %arg10[%c0_26, %c0_27, %c0_28], %126 {strides = array<i32>} : memref<4x8x8xf32, #tpu.memory_space<vmem>>, vector<1x8x8xf32>,
    %c0_29 = arith.constant 0 : index
    %c0_30 = arith.constant 0 : index
    %c0_31 = arith.constant 0 : index
    %127 = vector.load %arg8[%c0_29, %c0_30, %c0_31] : memref<4x8x1xf32, #tpu.memory_space<vmem>>, vector<1x8x1xf32>
    %128 = vector.shape_cast %127 : vector<1x8x1xf32> to vector<8x1xf32>
    %129 = vector.shape_cast %102 : vector<8x1xf32> to vector<1x8x1xf32>
    tpu.vector_store %arg8[%c0_29, %c0_30, %c0_31], %129 {strides = array<i32>} : memref<4x8x1xf32, #tpu.memory_space<vmem>>, vector<1x8x1xf32>,
    %cst_32 = arith.constant 0.000000e+00 : f32
    %130 = vector.broadcast %cst_32 : f32 to vector<8x128xf32>
    %c0_33 = arith.constant 0 : index
    %131 = memref.load %arg6[%c0_33] : memref<8xf32, #tpu.memory_space<smem>>
    %132 = vector.extract_strided_slice %4 {offsets = [0, 8], sizes = [8, 1], strides = [1, 1]} : vector<8x32xf32> to vector<8x1xf32>
    %133 = vector.extract_strided_slice %6 {offsets = [8, 0], sizes = [1, 128], strides = [1, 1]} : vector<32x128xf32> to vector<1x128xf32>
    %134 = vector.broadcast %132 : vector<8x1xf32> to vector<8x128xf32>
    %135 = vector.broadcast %133 : vector<1x128xf32> to vector<8x128xf32>
    %136 = arith.addf %134, %135 : vector<8x128xf32>
    %137 = math.tanh %136 : vector<8x128xf32>
    %138 = vector.broadcast %131 : f32 to vector<8x128xf32>
    %139 = arith.mulf %138, %137 : vector<8x128xf32>
    %140 = arith.addf %130, %139 : vector<8x128xf32>
    %c1_34 = arith.constant 1 : index
    %141 = memref.load %arg6[%c1_34] : memref<8xf32, #tpu.memory_space<smem>>
    %142 = vector.extract_strided_slice %4 {offsets = [0, 9], sizes = [8, 1], strides = [1, 1]} : vector<8x32xf32> to vector<8x1xf32>
    %143 = vector.extract_strided_slice %6 {offsets = [9, 0], sizes = [1, 128], strides = [1, 1]} : vector<32x128xf32> to vector<1x128xf32>
    %144 = vector.broadcast %142 : vector<8x1xf32> to vector<8x128xf32>
    %145 = vector.broadcast %143 : vector<1x128xf32> to vector<8x128xf32>
    %146 = arith.addf %144, %145 : vector<8x128xf32>
    %147 = math.tanh %146 : vector<8x128xf32>
    %148 = vector.broadcast %141 : f32 to vector<8x128xf32>
    %149 = arith.mulf %148, %147 : vector<8x128xf32>
    %150 = arith.addf %140, %149 : vector<8x128xf32>
    %c2_35 = arith.constant 2 : index
    %151 = memref.load %arg6[%c2_35] : memref<8xf32, #tpu.memory_space<smem>>
    %152 = vector.extract_strided_slice %4 {offsets = [0, 10], sizes = [8, 1], strides = [1, 1]} : vector<8x32xf32> to vector<8x1xf32>
    %153 = vector.extract_strided_slice %6 {offsets = [10, 0], sizes = [1, 128], strides = [1, 1]} : vector<32x128xf32> to vector<1x128xf32>
    %154 = vector.broadcast %152 : vector<8x1xf32> to vector<8x128xf32>
    %155 = vector.broadcast %153 : vector<1x128xf32> to vector<8x128xf32>
    %156 = arith.addf %154, %155 : vector<8x128xf32>
    %157 = math.tanh %156 : vector<8x128xf32>
    %158 = vector.broadcast %151 : f32 to vector<8x128xf32>
    %159 = arith.mulf %158, %157 : vector<8x128xf32>
    %160 = arith.addf %150, %159 : vector<8x128xf32>
    %c3_36 = arith.constant 3 : index
    %161 = memref.load %arg6[%c3_36] : memref<8xf32, #tpu.memory_space<smem>>
    %162 = vector.extract_strided_slice %4 {offsets = [0, 11], sizes = [8, 1], strides = [1, 1]} : vector<8x32xf32> to vector<8x1xf32>
    %163 = vector.extract_strided_slice %6 {offsets = [11, 0], sizes = [1, 128], strides = [1, 1]} : vector<32x128xf32> to vector<1x128xf32>
    %164 = vector.broadcast %162 : vector<8x1xf32> to vector<8x128xf32>
    %165 = vector.broadcast %163 : vector<1x128xf32> to vector<8x128xf32>
    %166 = arith.addf %164, %165 : vector<8x128xf32>
    %167 = math.tanh %166 : vector<8x128xf32>
    %168 = vector.broadcast %161 : f32 to vector<8x128xf32>
    %169 = arith.mulf %168, %167 : vector<8x128xf32>
    %170 = arith.addf %160, %169 : vector<8x128xf32>
    %c4_37 = arith.constant 4 : index
    %171 = memref.load %arg6[%c4_37] : memref<8xf32, #tpu.memory_space<smem>>
    %172 = vector.extract_strided_slice %4 {offsets = [0, 12], sizes = [8, 1], strides = [1, 1]} : vector<8x32xf32> to vector<8x1xf32>
    %173 = vector.extract_strided_slice %6 {offsets = [12, 0], sizes = [1, 128], strides = [1, 1]} : vector<32x128xf32> to vector<1x128xf32>
    %174 = vector.broadcast %172 : vector<8x1xf32> to vector<8x128xf32>
    %175 = vector.broadcast %173 : vector<1x128xf32> to vector<8x128xf32>
    %176 = arith.addf %174, %175 : vector<8x128xf32>
    %177 = math.tanh %176 : vector<8x128xf32>
    %178 = vector.broadcast %171 : f32 to vector<8x128xf32>
    %179 = arith.mulf %178, %177 : vector<8x128xf32>
    %180 = arith.addf %170, %179 : vector<8x128xf32>
    %c5_38 = arith.constant 5 : index
    %181 = memref.load %arg6[%c5_38] : memref<8xf32, #tpu.memory_space<smem>>
    %182 = vector.extract_strided_slice %4 {offsets = [0, 13], sizes = [8, 1], strides = [1, 1]} : vector<8x32xf32> to vector<8x1xf32>
    %183 = vector.extract_strided_slice %6 {offsets = [13, 0], sizes = [1, 128], strides = [1, 1]} : vector<32x128xf32> to vector<1x128xf32>
    %184 = vector.broadcast %182 : vector<8x1xf32> to vector<8x128xf32>
    %185 = vector.broadcast %183 : vector<1x128xf32> to vector<8x128xf32>
    %186 = arith.addf %184, %185 : vector<8x128xf32>
    %187 = math.tanh %186 : vector<8x128xf32>
    %188 = vector.broadcast %181 : f32 to vector<8x128xf32>
    %189 = arith.mulf %188, %187 : vector<8x128xf32>
    %190 = arith.addf %180, %189 : vector<8x128xf32>
    %c6_39 = arith.constant 6 : index
    %191 = memref.load %arg6[%c6_39] : memref<8xf32, #tpu.memory_space<smem>>
    %192 = vector.extract_strided_slice %4 {offsets = [0, 14], sizes = [8, 1], strides = [1, 1]} : vector<8x32xf32> to vector<8x1xf32>
    %193 = vector.extract_strided_slice %6 {offsets = [14, 0], sizes = [1, 128], strides = [1, 1]} : vector<32x128xf32> to vector<1x128xf32>
    %194 = vector.broadcast %192 : vector<8x1xf32> to vector<8x128xf32>
    %195 = vector.broadcast %193 : vector<1x128xf32> to vector<8x128xf32>
    %196 = arith.addf %194, %195 : vector<8x128xf32>
    %197 = math.tanh %196 : vector<8x128xf32>
    %198 = vector.broadcast %191 : f32 to vector<8x128xf32>
    %199 = arith.mulf %198, %197 : vector<8x128xf32>
    %200 = arith.addf %190, %199 : vector<8x128xf32>
    %c7_40 = arith.constant 7 : index
    %201 = memref.load %arg6[%c7_40] : memref<8xf32, #tpu.memory_space<smem>>
    %202 = vector.extract_strided_slice %4 {offsets = [0, 15], sizes = [8, 1], strides = [1, 1]} : vector<8x32xf32> to vector<8x1xf32>
    %203 = vector.extract_strided_slice %6 {offsets = [15, 0], sizes = [1, 128], strides = [1, 1]} : vector<32x128xf32> to vector<1x128xf32>
    %204 = vector.broadcast %202 : vector<8x1xf32> to vector<8x128xf32>
    %205 = vector.broadcast %203 : vector<1x128xf32> to vector<8x128xf32>
    %206 = arith.addf %204, %205 : vector<8x128xf32>
    %207 = math.tanh %206 : vector<8x128xf32>
    %208 = vector.broadcast %201 : f32 to vector<8x128xf32>
    %209 = arith.mulf %208, %207 : vector<8x128xf32>
    %210 = arith.addf %200, %209 : vector<8x128xf32>
    %cst_41 = arith.constant -1.000000e+30 : f32
    %211 = vector.broadcast %cst_41 : f32 to vector<8x128xf32>
    %212 = arith.select %14, %210, %211 : vector<8x128xi1>, vector<8x128xf32>
    %c1_42 = arith.constant 1 : index
    %c0_43 = arith.constant 0 : index
    %c0_44 = arith.constant 0 : index
    %213 = vector.load %arg8[%c1_42, %c0_43, %c0_44] : memref<4x8x1xf32, #tpu.memory_space<vmem>>, vector<1x8x1xf32>
    %214 = vector.shape_cast %213 : vector<1x8x1xf32> to vector<8x1xf32>
    %cst_45 = arith.constant dense<0xFF800000> : vector<8xf32>
    %215 = vector.multi_reduction <maximumf>, %212, %cst_45 [1] : vector<8x128xf32> to vector<8xf32>
    %216 = vector.shape_cast %215 : vector<8xf32> to vector<8x1xf32>
    %217 = arith.maximumf %214, %216 : vector<8x1xf32>
    %218 = arith.subf %214, %217 : vector<8x1xf32>
    %219 = math.exp %218 : vector<8x1xf32>
    %220 = vector.broadcast %217 : vector<8x1xf32> to vector<8x128xf32>
    %221 = arith.subf %212, %220 : vector<8x128xf32>
    %222 = math.exp %221 : vector<8x128xf32>
    %c1_46 = arith.constant 1 : index
    %c0_47 = arith.constant 0 : index
    %c0_48 = arith.constant 0 : index
    %223 = vector.load %arg9[%c1_46, %c0_47, %c0_48] : memref<4x8x1xf32, #tpu.memory_space<vmem>>, vector<1x8x1xf32>
    %224 = vector.shape_cast %223 : vector<1x8x1xf32> to vector<8x1xf32>
    %225 = arith.mulf %219, %224 : vector<8x1xf32>
    %cst_49 = arith.constant dense<0.000000e+00> : vector<8xf32>
    %226 = vector.multi_reduction <add>, %222, %cst_49 [1] : vector<8x128xf32> to vector<8xf32>
    %227 = vector.shape_cast %226 : vector<8xf32> to vector<8x1xf32>
    %228 = arith.addf %225, %227 : vector<8x1xf32>
    %c1_50 = arith.constant 1 : index
    %c0_51 = arith.constant 0 : index
    %c0_52 = arith.constant 0 : index
    %229 = vector.load %arg9[%c1_50, %c0_51, %c0_52] : memref<4x8x1xf32, #tpu.memory_space<vmem>>, vector<1x8x1xf32>
    %230 = vector.shape_cast %229 : vector<1x8x1xf32> to vector<8x1xf32>
    %231 = vector.shape_cast %228 : vector<8x1xf32> to vector<1x8x1xf32>
    tpu.vector_store %arg9[%c1_50, %c0_51, %c0_52], %231 {strides = array<i32>} : memref<4x8x1xf32, #tpu.memory_space<vmem>>, vector<1x8x1xf32>,
    %232 = vector.extract_strided_slice %8 {offsets = [0, 8], sizes = [128, 8], strides = [1, 1]} : vector<128x32xf32> to vector<128x8xf32>
    %c1_53 = arith.constant 1 : index
    %c0_54 = arith.constant 0 : index
    %c0_55 = arith.constant 0 : index
    %233 = vector.load %arg10[%c1_53, %c0_54, %c0_55] : memref<4x8x8xf32, #tpu.memory_space<vmem>>, vector<1x8x8xf32>
    %234 = vector.shape_cast %233 : vector<1x8x8xf32> to vector<8x8xf32>
    %235 = vector.broadcast %219 : vector<8x1xf32> to vector<8x8xf32>
    %236 = arith.mulf %235, %234 : vector<8x8xf32>
    %cst_56 = arith.constant dense<0.000000e+00> : vector<8x8xf32>
    %237 = tpu.matmul %222, %232, %cst_56 {dimension_numbers = #tpu.dot_dimension_numbers<[1], [0], [0], [1], [0, 0, 1, 1], [], []>} : vector<8x128xf32>, vector<128x8xf32>, vector<8x8xf32> -> vector<8x8xf32>
    %238 = arith.addf %236, %237 : vector<8x8xf32>
    %c1_57 = arith.constant 1 : index
    %c0_58 = arith.constant 0 : index
    %c0_59 = arith.constant 0 : index
    %239 = vector.load %arg10[%c1_57, %c0_58, %c0_59] : memref<4x8x8xf32, #tpu.memory_space<vmem>>, vector<1x8x8xf32>
    %240 = vector.shape_cast %239 : vector<1x8x8xf32> to vector<8x8xf32>
    %241 = vector.shape_cast %238 : vector<8x8xf32> to vector<1x8x8xf32>
    tpu.vector_store %arg10[%c1_57, %c0_58, %c0_59], %241 {strides = array<i32>} : memref<4x8x8xf32, #tpu.memory_space<vmem>>, vector<1x8x8xf32>,
    %c1_60 = arith.constant 1 : index
    %c0_61 = arith.constant 0 : index
    %c0_62 = arith.constant 0 : index
    %242 = vector.load %arg8[%c1_60, %c0_61, %c0_62] : memref<4x8x1xf32, #tpu.memory_space<vmem>>, vector<1x8x1xf32>
    %243 = vector.shape_cast %242 : vector<1x8x1xf32> to vector<8x1xf32>
    %244 = vector.shape_cast %217 : vector<8x1xf32> to vector<1x8x1xf32>
    tpu.vector_store %arg8[%c1_60, %c0_61, %c0_62], %244 {strides = array<i32>} : memref<4x8x1xf32, #tpu.memory_space<vmem>>, vector<1x8x1xf32>,
    %cst_63 = arith.constant 0.000000e+00 : f32
    %245 = vector.broadcast %cst_63 : f32 to vector<8x128xf32>
    %c0_64 = arith.constant 0 : index
    %246 = memref.load %arg6[%c0_64] : memref<8xf32, #tpu.memory_space<smem>>
    %247 = vector.extract_strided_slice %4 {offsets = [0, 16], sizes = [8, 1], strides = [1, 1]} : vector<8x32xf32> to vector<8x1xf32>
    %248 = vector.extract_strided_slice %6 {offsets = [16, 0], sizes = [1, 128], strides = [1, 1]} : vector<32x128xf32> to vector<1x128xf32>
    %249 = vector.broadcast %247 : vector<8x1xf32> to vector<8x128xf32>
    %250 = vector.broadcast %248 : vector<1x128xf32> to vector<8x128xf32>
    %251 = arith.addf %249, %250 : vector<8x128xf32>
    %252 = math.tanh %251 : vector<8x128xf32>
    %253 = vector.broadcast %246 : f32 to vector<8x128xf32>
    %254 = arith.mulf %253, %252 : vector<8x128xf32>
    %255 = arith.addf %245, %254 : vector<8x128xf32>
    %c1_65 = arith.constant 1 : index
    %256 = memref.load %arg6[%c1_65] : memref<8xf32, #tpu.memory_space<smem>>
    %257 = vector.extract_strided_slice %4 {offsets = [0, 17], sizes = [8, 1], strides = [1, 1]} : vector<8x32xf32> to vector<8x1xf32>
    %258 = vector.extract_strided_slice %6 {offsets = [17, 0], sizes = [1, 128], strides = [1, 1]} : vector<32x128xf32> to vector<1x128xf32>
    %259 = vector.broadcast %257 : vector<8x1xf32> to vector<8x128xf32>
    %260 = vector.broadcast %258 : vector<1x128xf32> to vector<8x128xf32>
    %261 = arith.addf %259, %260 : vector<8x128xf32>
    %262 = math.tanh %261 : vector<8x128xf32>
    %263 = vector.broadcast %256 : f32 to vector<8x128xf32>
    %264 = arith.mulf %263, %262 : vector<8x128xf32>
    %265 = arith.addf %255, %264 : vector<8x128xf32>
    %c2_66 = arith.constant 2 : index
    %266 = memref.load %arg6[%c2_66] : memref<8xf32, #tpu.memory_space<smem>>
    %267 = vector.extract_strided_slice %4 {offsets = [0, 18], sizes = [8, 1], strides = [1, 1]} : vector<8x32xf32> to vector<8x1xf32>
    %268 = vector.extract_strided_slice %6 {offsets = [18, 0], sizes = [1, 128], strides = [1, 1]} : vector<32x128xf32> to vector<1x128xf32>
    %269 = vector.broadcast %267 : vector<8x1xf32> to vector<8x128xf32>
    %270 = vector.broadcast %268 : vector<1x128xf32> to vector<8x128xf32>
    %271 = arith.addf %269, %270 : vector<8x128xf32>
    %272 = math.tanh %271 : vector<8x128xf32>
    %273 = vector.broadcast %266 : f32 to vector<8x128xf32>
    %274 = arith.mulf %273, %272 : vector<8x128xf32>
    %275 = arith.addf %265, %274 : vector<8x128xf32>
    %c3_67 = arith.constant 3 : index
    %276 = memref.load %arg6[%c3_67] : memref<8xf32, #tpu.memory_space<smem>>
    %277 = vector.extract_strided_slice %4 {offsets = [0, 19], sizes = [8, 1], strides = [1, 1]} : vector<8x32xf32> to vector<8x1xf32>
    %278 = vector.extract_strided_slice %6 {offsets = [19, 0], sizes = [1, 128], strides = [1, 1]} : vector<32x128xf32> to vector<1x128xf32>
    %279 = vector.broadcast %277 : vector<8x1xf32> to vector<8x128xf32>
    %280 = vector.broadcast %278 : vector<1x128xf32> to vector<8x128xf32>
    %281 = arith.addf %279, %280 : vector<8x128xf32>
    %282 = math.tanh %281 : vector<8x128xf32>
    %283 = vector.broadcast %276 : f32 to vector<8x128xf32>
    %284 = arith.mulf %283, %282 : vector<8x128xf32>
    %285 = arith.addf %275, %284 : vector<8x128xf32>
    %c4_68 = arith.constant 4 : index
    %286 = memref.load %arg6[%c4_68] : memref<8xf32, #tpu.memory_space<smem>>
    %287 = vector.extract_strided_slice %4 {offsets = [0, 20], sizes = [8, 1], strides = [1, 1]} : vector<8x32xf32> to vector<8x1xf32>
    %288 = vector.extract_strided_slice %6 {offsets = [20, 0], sizes = [1, 128], strides = [1, 1]} : vector<32x128xf32> to vector<1x128xf32>
    %289 = vector.broadcast %287 : vector<8x1xf32> to vector<8x128xf32>
    %290 = vector.broadcast %288 : vector<1x128xf32> to vector<8x128xf32>
    %291 = arith.addf %289, %290 : vector<8x128xf32>
    %292 = math.tanh %291 : vector<8x128xf32>
    %293 = vector.broadcast %286 : f32 to vector<8x128xf32>
    %294 = arith.mulf %293, %292 : vector<8x128xf32>
    %295 = arith.addf %285, %294 : vector<8x128xf32>
    %c5_69 = arith.constant 5 : index
    %296 = memref.load %arg6[%c5_69] : memref<8xf32, #tpu.memory_space<smem>>
    %297 = vector.extract_strided_slice %4 {offsets = [0, 21], sizes = [8, 1], strides = [1, 1]} : vector<8x32xf32> to vector<8x1xf32>
    %298 = vector.extract_strided_slice %6 {offsets = [21, 0], sizes = [1, 128], strides = [1, 1]} : vector<32x128xf32> to vector<1x128xf32>
    %299 = vector.broadcast %297 : vector<8x1xf32> to vector<8x128xf32>
    %300 = vector.broadcast %298 : vector<1x128xf32> to vector<8x128xf32>
    %301 = arith.addf %299, %300 : vector<8x128xf32>
    %302 = math.tanh %301 : vector<8x128xf32>
    %303 = vector.broadcast %296 : f32 to vector<8x128xf32>
    %304 = arith.mulf %303, %302 : vector<8x128xf32>
    %305 = arith.addf %295, %304 : vector<8x128xf32>
    %c6_70 = arith.constant 6 : index
    %306 = memref.load %arg6[%c6_70] : memref<8xf32, #tpu.memory_space<smem>>
    %307 = vector.extract_strided_slice %4 {offsets = [0, 22], sizes = [8, 1], strides = [1, 1]} : vector<8x32xf32> to vector<8x1xf32>
    %308 = vector.extract_strided_slice %6 {offsets = [22, 0], sizes = [1, 128], strides = [1, 1]} : vector<32x128xf32> to vector<1x128xf32>
    %309 = vector.broadcast %307 : vector<8x1xf32> to vector<8x128xf32>
    %310 = vector.broadcast %308 : vector<1x128xf32> to vector<8x128xf32>
    %311 = arith.addf %309, %310 : vector<8x128xf32>
    %312 = math.tanh %311 : vector<8x128xf32>
    %313 = vector.broadcast %306 : f32 to vector<8x128xf32>
    %314 = arith.mulf %313, %312 : vector<8x128xf32>
    %315 = arith.addf %305, %314 : vector<8x128xf32>
    %c7_71 = arith.constant 7 : index
    %316 = memref.load %arg6[%c7_71] : memref<8xf32, #tpu.memory_space<smem>>
    %317 = vector.extract_strided_slice %4 {offsets = [0, 23], sizes = [8, 1], strides = [1, 1]} : vector<8x32xf32> to vector<8x1xf32>
    %318 = vector.extract_strided_slice %6 {offsets = [23, 0], sizes = [1, 128], strides = [1, 1]} : vector<32x128xf32> to vector<1x128xf32>
    %319 = vector.broadcast %317 : vector<8x1xf32> to vector<8x128xf32>
    %320 = vector.broadcast %318 : vector<1x128xf32> to vector<8x128xf32>
    %321 = arith.addf %319, %320 : vector<8x128xf32>
    %322 = math.tanh %321 : vector<8x128xf32>
    %323 = vector.broadcast %316 : f32 to vector<8x128xf32>
    %324 = arith.mulf %323, %322 : vector<8x128xf32>
    %325 = arith.addf %315, %324 : vector<8x128xf32>
    %cst_72 = arith.constant -1.000000e+30 : f32
    %326 = vector.broadcast %cst_72 : f32 to vector<8x128xf32>
    %327 = arith.select %14, %325, %326 : vector<8x128xi1>, vector<8x128xf32>
    %c2_73 = arith.constant 2 : index
    %c0_74 = arith.constant 0 : index
    %c0_75 = arith.constant 0 : index
    %328 = vector.load %arg8[%c2_73, %c0_74, %c0_75] : memref<4x8x1xf32, #tpu.memory_space<vmem>>, vector<1x8x1xf32>
    %329 = vector.shape_cast %328 : vector<1x8x1xf32> to vector<8x1xf32>
    %cst_76 = arith.constant dense<0xFF800000> : vector<8xf32>
    %330 = vector.multi_reduction <maximumf>, %327, %cst_76 [1] : vector<8x128xf32> to vector<8xf32>
    %331 = vector.shape_cast %330 : vector<8xf32> to vector<8x1xf32>
    %332 = arith.maximumf %329, %331 : vector<8x1xf32>
    %333 = arith.subf %329, %332 : vector<8x1xf32>
    %334 = math.exp %333 : vector<8x1xf32>
    %335 = vector.broadcast %332 : vector<8x1xf32> to vector<8x128xf32>
    %336 = arith.subf %327, %335 : vector<8x128xf32>
    %337 = math.exp %336 : vector<8x128xf32>
    %c2_77 = arith.constant 2 : index
    %c0_78 = arith.constant 0 : index
    %c0_79 = arith.constant 0 : index
    %338 = vector.load %arg9[%c2_77, %c0_78, %c0_79] : memref<4x8x1xf32, #tpu.memory_space<vmem>>, vector<1x8x1xf32>
    %339 = vector.shape_cast %338 : vector<1x8x1xf32> to vector<8x1xf32>
    %340 = arith.mulf %334, %339 : vector<8x1xf32>
    %cst_80 = arith.constant dense<0.000000e+00> : vector<8xf32>
    %341 = vector.multi_reduction <add>, %337, %cst_80 [1] : vector<8x128xf32> to vector<8xf32>
    %342 = vector.shape_cast %341 : vector<8xf32> to vector<8x1xf32>
    %343 = arith.addf %340, %342 : vector<8x1xf32>
    %c2_81 = arith.constant 2 : index
    %c0_82 = arith.constant 0 : index
    %c0_83 = arith.constant 0 : index
    %344 = vector.load %arg9[%c2_81, %c0_82, %c0_83] : memref<4x8x1xf32, #tpu.memory_space<vmem>>, vector<1x8x1xf32>
    %345 = vector.shape_cast %344 : vector<1x8x1xf32> to vector<8x1xf32>
    %346 = vector.shape_cast %343 : vector<8x1xf32> to vector<1x8x1xf32>
    tpu.vector_store %arg9[%c2_81, %c0_82, %c0_83], %346 {strides = array<i32>} : memref<4x8x1xf32, #tpu.memory_space<vmem>>, vector<1x8x1xf32>,
    %347 = vector.extract_strided_slice %8 {offsets = [0, 16], sizes = [128, 8], strides = [1, 1]} : vector<128x32xf32> to vector<128x8xf32>
    %c2_84 = arith.constant 2 : index
    %c0_85 = arith.constant 0 : index
    %c0_86 = arith.constant 0 : index
    %348 = vector.load %arg10[%c2_84, %c0_85, %c0_86] : memref<4x8x8xf32, #tpu.memory_space<vmem>>, vector<1x8x8xf32>
    %349 = vector.shape_cast %348 : vector<1x8x8xf32> to vector<8x8xf32>
    %350 = vector.broadcast %334 : vector<8x1xf32> to vector<8x8xf32>
    %351 = arith.mulf %350, %349 : vector<8x8xf32>
    %cst_87 = arith.constant dense<0.000000e+00> : vector<8x8xf32>
    %352 = tpu.matmul %337, %347, %cst_87 {dimension_numbers = #tpu.dot_dimension_numbers<[1], [0], [0], [1], [0, 0, 1, 1], [], []>} : vector<8x128xf32>, vector<128x8xf32>, vector<8x8xf32> -> vector<8x8xf32>
    %353 = arith.addf %351, %352 : vector<8x8xf32>
    %c2_88 = arith.constant 2 : index
    %c0_89 = arith.constant 0 : index
    %c0_90 = arith.constant 0 : index
    %354 = vector.load %arg10[%c2_88, %c0_89, %c0_90] : memref<4x8x8xf32, #tpu.memory_space<vmem>>, vector<1x8x8xf32>
    %355 = vector.shape_cast %354 : vector<1x8x8xf32> to vector<8x8xf32>
    %356 = vector.shape_cast %353 : vector<8x8xf32> to vector<1x8x8xf32>
    tpu.vector_store %arg10[%c2_88, %c0_89, %c0_90], %356 {strides = array<i32>} : memref<4x8x8xf32, #tpu.memory_space<vmem>>, vector<1x8x8xf32>,
    %c2_91 = arith.constant 2 : index
    %c0_92 = arith.constant 0 : index
    %c0_93 = arith.constant 0 : index
    %357 = vector.load %arg8[%c2_91, %c0_92, %c0_93] : memref<4x8x1xf32, #tpu.memory_space<vmem>>, vector<1x8x1xf32>
    %358 = vector.shape_cast %357 : vector<1x8x1xf32> to vector<8x1xf32>
    %359 = vector.shape_cast %332 : vector<8x1xf32> to vector<1x8x1xf32>
    tpu.vector_store %arg8[%c2_91, %c0_92, %c0_93], %359 {strides = array<i32>} : memref<4x8x1xf32, #tpu.memory_space<vmem>>, vector<1x8x1xf32>,
    %cst_94 = arith.constant 0.000000e+00 : f32
    %360 = vector.broadcast %cst_94 : f32 to vector<8x128xf32>
    %c0_95 = arith.constant 0 : index
    %361 = memref.load %arg6[%c0_95] : memref<8xf32, #tpu.memory_space<smem>>
    %362 = vector.extract_strided_slice %4 {offsets = [0, 24], sizes = [8, 1], strides = [1, 1]} : vector<8x32xf32> to vector<8x1xf32>
    %363 = vector.extract_strided_slice %6 {offsets = [24, 0], sizes = [1, 128], strides = [1, 1]} : vector<32x128xf32> to vector<1x128xf32>
    %364 = vector.broadcast %362 : vector<8x1xf32> to vector<8x128xf32>
    %365 = vector.broadcast %363 : vector<1x128xf32> to vector<8x128xf32>
    %366 = arith.addf %364, %365 : vector<8x128xf32>
    %367 = math.tanh %366 : vector<8x128xf32>
    %368 = vector.broadcast %361 : f32 to vector<8x128xf32>
    %369 = arith.mulf %368, %367 : vector<8x128xf32>
    %370 = arith.addf %360, %369 : vector<8x128xf32>
    %c1_96 = arith.constant 1 : index
    %371 = memref.load %arg6[%c1_96] : memref<8xf32, #tpu.memory_space<smem>>
    %372 = vector.extract_strided_slice %4 {offsets = [0, 25], sizes = [8, 1], strides = [1, 1]} : vector<8x32xf32> to vector<8x1xf32>
    %373 = vector.extract_strided_slice %6 {offsets = [25, 0], sizes = [1, 128], strides = [1, 1]} : vector<32x128xf32> to vector<1x128xf32>
    %374 = vector.broadcast %372 : vector<8x1xf32> to vector<8x128xf32>
    %375 = vector.broadcast %373 : vector<1x128xf32> to vector<8x128xf32>
    %376 = arith.addf %374, %375 : vector<8x128xf32>
    %377 = math.tanh %376 : vector<8x128xf32>
    %378 = vector.broadcast %371 : f32 to vector<8x128xf32>
    %379 = arith.mulf %378, %377 : vector<8x128xf32>
    %380 = arith.addf %370, %379 : vector<8x128xf32>
    %c2_97 = arith.constant 2 : index
    %381 = memref.load %arg6[%c2_97] : memref<8xf32, #tpu.memory_space<smem>>
    %382 = vector.extract_strided_slice %4 {offsets = [0, 26], sizes = [8, 1], strides = [1, 1]} : vector<8x32xf32> to vector<8x1xf32>
    %383 = vector.extract_strided_slice %6 {offsets = [26, 0], sizes = [1, 128], strides = [1, 1]} : vector<32x128xf32> to vector<1x128xf32>
    %384 = vector.broadcast %382 : vector<8x1xf32> to vector<8x128xf32>
    %385 = vector.broadcast %383 : vector<1x128xf32> to vector<8x128xf32>
    %386 = arith.addf %384, %385 : vector<8x128xf32>
    %387 = math.tanh %386 : vector<8x128xf32>
    %388 = vector.broadcast %381 : f32 to vector<8x128xf32>
    %389 = arith.mulf %388, %387 : vector<8x128xf32>
    %390 = arith.addf %380, %389 : vector<8x128xf32>
    %c3_98 = arith.constant 3 : index
    %391 = memref.load %arg6[%c3_98] : memref<8xf32, #tpu.memory_space<smem>>
    %392 = vector.extract_strided_slice %4 {offsets = [0, 27], sizes = [8, 1], strides = [1, 1]} : vector<8x32xf32> to vector<8x1xf32>
    %393 = vector.extract_strided_slice %6 {offsets = [27, 0], sizes = [1, 128], strides = [1, 1]} : vector<32x128xf32> to vector<1x128xf32>
    %394 = vector.broadcast %392 : vector<8x1xf32> to vector<8x128xf32>
    %395 = vector.broadcast %393 : vector<1x128xf32> to vector<8x128xf32>
    %396 = arith.addf %394, %395 : vector<8x128xf32>
    %397 = math.tanh %396 : vector<8x128xf32>
    %398 = vector.broadcast %391 : f32 to vector<8x128xf32>
    %399 = arith.mulf %398, %397 : vector<8x128xf32>
    %400 = arith.addf %390, %399 : vector<8x128xf32>
    %c4_99 = arith.constant 4 : index
    %401 = memref.load %arg6[%c4_99] : memref<8xf32, #tpu.memory_space<smem>>
    %402 = vector.extract_strided_slice %4 {offsets = [0, 28], sizes = [8, 1], strides = [1, 1]} : vector<8x32xf32> to vector<8x1xf32>
    %403 = vector.extract_strided_slice %6 {offsets = [28, 0], sizes = [1, 128], strides = [1, 1]} : vector<32x128xf32> to vector<1x128xf32>
    %404 = vector.broadcast %402 : vector<8x1xf32> to vector<8x128xf32>
    %405 = vector.broadcast %403 : vector<1x128xf32> to vector<8x128xf32>
    %406 = arith.addf %404, %405 : vector<8x128xf32>
    %407 = math.tanh %406 : vector<8x128xf32>
    %408 = vector.broadcast %401 : f32 to vector<8x128xf32>
    %409 = arith.mulf %408, %407 : vector<8x128xf32>
    %410 = arith.addf %400, %409 : vector<8x128xf32>
    %c5_100 = arith.constant 5 : index
    %411 = memref.load %arg6[%c5_100] : memref<8xf32, #tpu.memory_space<smem>>
    %412 = vector.extract_strided_slice %4 {offsets = [0, 29], sizes = [8, 1], strides = [1, 1]} : vector<8x32xf32> to vector<8x1xf32>
    %413 = vector.extract_strided_slice %6 {offsets = [29, 0], sizes = [1, 128], strides = [1, 1]} : vector<32x128xf32> to vector<1x128xf32>
    %414 = vector.broadcast %412 : vector<8x1xf32> to vector<8x128xf32>
    %415 = vector.broadcast %413 : vector<1x128xf32> to vector<8x128xf32>
    %416 = arith.addf %414, %415 : vector<8x128xf32>
    %417 = math.tanh %416 : vector<8x128xf32>
    %418 = vector.broadcast %411 : f32 to vector<8x128xf32>
    %419 = arith.mulf %418, %417 : vector<8x128xf32>
    %420 = arith.addf %410, %419 : vector<8x128xf32>
    %c6_101 = arith.constant 6 : index
    %421 = memref.load %arg6[%c6_101] : memref<8xf32, #tpu.memory_space<smem>>
    %422 = vector.extract_strided_slice %4 {offsets = [0, 30], sizes = [8, 1], strides = [1, 1]} : vector<8x32xf32> to vector<8x1xf32>
    %423 = vector.extract_strided_slice %6 {offsets = [30, 0], sizes = [1, 128], strides = [1, 1]} : vector<32x128xf32> to vector<1x128xf32>
    %424 = vector.broadcast %422 : vector<8x1xf32> to vector<8x128xf32>
    %425 = vector.broadcast %423 : vector<1x128xf32> to vector<8x128xf32>
    %426 = arith.addf %424, %425 : vector<8x128xf32>
    %427 = math.tanh %426 : vector<8x128xf32>
    %428 = vector.broadcast %421 : f32 to vector<8x128xf32>
    %429 = arith.mulf %428, %427 : vector<8x128xf32>
    %430 = arith.addf %420, %429 : vector<8x128xf32>
    %c7_102 = arith.constant 7 : index
    %431 = memref.load %arg6[%c7_102] : memref<8xf32, #tpu.memory_space<smem>>
    %432 = vector.extract_strided_slice %4 {offsets = [0, 31], sizes = [8, 1], strides = [1, 1]} : vector<8x32xf32> to vector<8x1xf32>
    %433 = vector.extract_strided_slice %6 {offsets = [31, 0], sizes = [1, 128], strides = [1, 1]} : vector<32x128xf32> to vector<1x128xf32>
    %434 = vector.broadcast %432 : vector<8x1xf32> to vector<8x128xf32>
    %435 = vector.broadcast %433 : vector<1x128xf32> to vector<8x128xf32>
    %436 = arith.addf %434, %435 : vector<8x128xf32>
    %437 = math.tanh %436 : vector<8x128xf32>
    %438 = vector.broadcast %431 : f32 to vector<8x128xf32>
    %439 = arith.mulf %438, %437 : vector<8x128xf32>
    %440 = arith.addf %430, %439 : vector<8x128xf32>
    %cst_103 = arith.constant -1.000000e+30 : f32
    %441 = vector.broadcast %cst_103 : f32 to vector<8x128xf32>
    %442 = arith.select %14, %440, %441 : vector<8x128xi1>, vector<8x128xf32>
    %c3_104 = arith.constant 3 : index
    %c0_105 = arith.constant 0 : index
    %c0_106 = arith.constant 0 : index
    %443 = vector.load %arg8[%c3_104, %c0_105, %c0_106] : memref<4x8x1xf32, #tpu.memory_space<vmem>>, vector<1x8x1xf32>
    %444 = vector.shape_cast %443 : vector<1x8x1xf32> to vector<8x1xf32>
    %cst_107 = arith.constant dense<0xFF800000> : vector<8xf32>
    %445 = vector.multi_reduction <maximumf>, %442, %cst_107 [1] : vector<8x128xf32> to vector<8xf32>
    %446 = vector.shape_cast %445 : vector<8xf32> to vector<8x1xf32>
    %447 = arith.maximumf %444, %446 : vector<8x1xf32>
    %448 = arith.subf %444, %447 : vector<8x1xf32>
    %449 = math.exp %448 : vector<8x1xf32>
    %450 = vector.broadcast %447 : vector<8x1xf32> to vector<8x128xf32>
    %451 = arith.subf %442, %450 : vector<8x128xf32>
    %452 = math.exp %451 : vector<8x128xf32>
    %c3_108 = arith.constant 3 : index
    %c0_109 = arith.constant 0 : index
    %c0_110 = arith.constant 0 : index
    %453 = vector.load %arg9[%c3_108, %c0_109, %c0_110] : memref<4x8x1xf32, #tpu.memory_space<vmem>>, vector<1x8x1xf32>
    %454 = vector.shape_cast %453 : vector<1x8x1xf32> to vector<8x1xf32>
    %455 = arith.mulf %449, %454 : vector<8x1xf32>
    %cst_111 = arith.constant dense<0.000000e+00> : vector<8xf32>
    %456 = vector.multi_reduction <add>, %452, %cst_111 [1] : vector<8x128xf32> to vector<8xf32>
    %457 = vector.shape_cast %456 : vector<8xf32> to vector<8x1xf32>
    %458 = arith.addf %455, %457 : vector<8x1xf32>
    %c3_112 = arith.constant 3 : index
    %c0_113 = arith.constant 0 : index
    %c0_114 = arith.constant 0 : index
    %459 = vector.load %arg9[%c3_112, %c0_113, %c0_114] : memref<4x8x1xf32, #tpu.memory_space<vmem>>, vector<1x8x1xf32>
    %460 = vector.shape_cast %459 : vector<1x8x1xf32> to vector<8x1xf32>
    %461 = vector.shape_cast %458 : vector<8x1xf32> to vector<1x8x1xf32>
    tpu.vector_store %arg9[%c3_112, %c0_113, %c0_114], %461 {strides = array<i32>} : memref<4x8x1xf32, #tpu.memory_space<vmem>>, vector<1x8x1xf32>,
    %462 = vector.extract_strided_slice %8 {offsets = [0, 24], sizes = [128, 8], strides = [1, 1]} : vector<128x32xf32> to vector<128x8xf32>
    %c3_115 = arith.constant 3 : index
    %c0_116 = arith.constant 0 : index
    %c0_117 = arith.constant 0 : index
    %463 = vector.load %arg10[%c3_115, %c0_116, %c0_117] : memref<4x8x8xf32, #tpu.memory_space<vmem>>, vector<1x8x8xf32>
    %464 = vector.shape_cast %463 : vector<1x8x8xf32> to vector<8x8xf32>
    %465 = vector.broadcast %449 : vector<8x1xf32> to vector<8x8xf32>
    %466 = arith.mulf %465, %464 : vector<8x8xf32>
    %cst_118 = arith.constant dense<0.000000e+00> : vector<8x8xf32>
    %467 = tpu.matmul %452, %462, %cst_118 {dimension_numbers = #tpu.dot_dimension_numbers<[1], [0], [0], [1], [0, 0, 1, 1], [], []>} : vector<8x128xf32>, vector<128x8xf32>, vector<8x8xf32> -> vector<8x8xf32>
    %468 = arith.addf %466, %467 : vector<8x8xf32>
    %c3_119 = arith.constant 3 : index
    %c0_120 = arith.constant 0 : index
    %c0_121 = arith.constant 0 : index
    %469 = vector.load %arg10[%c3_119, %c0_120, %c0_121] : memref<4x8x8xf32, #tpu.memory_space<vmem>>, vector<1x8x8xf32>
    %470 = vector.shape_cast %469 : vector<1x8x8xf32> to vector<8x8xf32>
    %471 = vector.shape_cast %468 : vector<8x8xf32> to vector<1x8x8xf32>
    tpu.vector_store %arg10[%c3_119, %c0_120, %c0_121], %471 {strides = array<i32>} : memref<4x8x8xf32, #tpu.memory_space<vmem>>, vector<1x8x8xf32>,
    %c3_122 = arith.constant 3 : index
    %c0_123 = arith.constant 0 : index
    %c0_124 = arith.constant 0 : index
    %472 = vector.load %arg8[%c3_122, %c0_123, %c0_124] : memref<4x8x1xf32, #tpu.memory_space<vmem>>, vector<1x8x1xf32>
    %473 = vector.shape_cast %472 : vector<1x8x1xf32> to vector<8x1xf32>
    %474 = vector.shape_cast %447 : vector<8x1xf32> to vector<1x8x1xf32>
    tpu.vector_store %arg8[%c3_122, %c0_123, %c0_124], %474 {strides = array<i32>} : memref<4x8x1xf32, #tpu.memory_space<vmem>>, vector<1x8x1xf32>,
    %c0_i32_125 = arith.constant 0 : i32
    %475 = arith.cmpi eq, %arg2, %c0_i32_125 : i32
    %476 = arith.extui %475 : i1 to i32
    %c0_i32_126 = arith.constant 0 : i32
    %477 = arith.cmpi ne, %476, %c0_i32_126 : i32
    scf.if %477 {
      %c0_127 = arith.constant 0 : index
      %c0_128 = arith.constant 0 : index
      %c0_129 = arith.constant 0 : index
      %478 = vector.load %arg10[%c0_127, %c0_128, %c0_129] : memref<4x8x8xf32, #tpu.memory_space<vmem>>, vector<1x8x8xf32>
      %479 = vector.shape_cast %478 : vector<1x8x8xf32> to vector<8x8xf32>
      %c0_130 = arith.constant 0 : index
      %c0_131 = arith.constant 0 : index
      %c0_132 = arith.constant 0 : index
      %480 = vector.load %arg9[%c0_130, %c0_131, %c0_132] : memref<4x8x1xf32, #tpu.memory_space<vmem>>, vector<1x8x1xf32>
      %481 = vector.shape_cast %480 : vector<1x8x1xf32> to vector<8x1xf32>
      %cst_133 = arith.constant 1.000000e+00 : f32
      %482 = vector.broadcast %cst_133 : f32 to vector<8x1xf32>
      %483 = arith.divf %482, %481 : vector<8x1xf32>
      %484 = vector.broadcast %483 : vector<8x1xf32> to vector<8x8xf32>
      %485 = arith.mulf %479, %484 : vector<8x8xf32>
      %c1_134 = arith.constant 1 : index
      %c0_135 = arith.constant 0 : index
      %c0_136 = arith.constant 0 : index
      %486 = vector.load %arg10[%c1_134, %c0_135, %c0_136] : memref<4x8x8xf32, #tpu.memory_space<vmem>>, vector<1x8x8xf32>
      %487 = vector.shape_cast %486 : vector<1x8x8xf32> to vector<8x8xf32>
      %c1_137 = arith.constant 1 : index
      %c0_138 = arith.constant 0 : index
      %c0_139 = arith.constant 0 : index
      %488 = vector.load %arg9[%c1_137, %c0_138, %c0_139] : memref<4x8x1xf32, #tpu.memory_space<vmem>>, vector<1x8x1xf32>
      %489 = vector.shape_cast %488 : vector<1x8x1xf32> to vector<8x1xf32>
      %cst_140 = arith.constant 1.000000e+00 : f32
      %490 = vector.broadcast %cst_140 : f32 to vector<8x1xf32>
      %491 = arith.divf %490, %489 : vector<8x1xf32>
      %492 = vector.broadcast %491 : vector<8x1xf32> to vector<8x8xf32>
      %493 = arith.mulf %487, %492 : vector<8x8xf32>
      %c2_141 = arith.constant 2 : index
      %c0_142 = arith.constant 0 : index
      %c0_143 = arith.constant 0 : index
      %494 = vector.load %arg10[%c2_141, %c0_142, %c0_143] : memref<4x8x8xf32, #tpu.memory_space<vmem>>, vector<1x8x8xf32>
      %495 = vector.shape_cast %494 : vector<1x8x8xf32> to vector<8x8xf32>
      %c2_144 = arith.constant 2 : index
      %c0_145 = arith.constant 0 : index
      %c0_146 = arith.constant 0 : index
      %496 = vector.load %arg9[%c2_144, %c0_145, %c0_146] : memref<4x8x1xf32, #tpu.memory_space<vmem>>, vector<1x8x1xf32>
      %497 = vector.shape_cast %496 : vector<1x8x1xf32> to vector<8x1xf32>
      %cst_147 = arith.constant 1.000000e+00 : f32
      %498 = vector.broadcast %cst_147 : f32 to vector<8x1xf32>
      %499 = arith.divf %498, %497 : vector<8x1xf32>
      %500 = vector.broadcast %499 : vector<8x1xf32> to vector<8x8xf32>
      %501 = arith.mulf %495, %500 : vector<8x8xf32>
      %c3_148 = arith.constant 3 : index
      %c0_149 = arith.constant 0 : index
      %c0_150 = arith.constant 0 : index
      %502 = vector.load %arg10[%c3_148, %c0_149, %c0_150] : memref<4x8x8xf32, #tpu.memory_space<vmem>>, vector<1x8x8xf32>
      %503 = vector.shape_cast %502 : vector<1x8x8xf32> to vector<8x8xf32>
      %c3_151 = arith.constant 3 : index
      %c0_152 = arith.constant 0 : index
      %c0_153 = arith.constant 0 : index
      %504 = vector.load %arg9[%c3_151, %c0_152, %c0_153] : memref<4x8x1xf32, #tpu.memory_space<vmem>>, vector<1x8x1xf32>
      %505 = vector.shape_cast %504 : vector<1x8x1xf32> to vector<8x1xf32>
      %cst_154 = arith.constant 1.000000e+00 : f32
      %506 = vector.broadcast %cst_154 : f32 to vector<8x1xf32>
      %507 = arith.divf %506, %505 : vector<8x1xf32>
      %508 = vector.broadcast %507 : vector<8x1xf32> to vector<8x8xf32>
      %509 = arith.mulf %503, %508 : vector<8x8xf32>
      %510 = tpu.concatenate %485, %493, %501, %509 in 1 : vector<8x8xf32>, vector<8x8xf32>, vector<8x8xf32>, vector<8x8xf32> -> vector<8x32xf32>
      %c0_155 = arith.constant 0 : index
      %c0_156 = arith.constant 0 : index
      %c0_157 = arith.constant 0 : index
      %511 = vector.load %arg7[%c0_155, %c0_156, %c0_157] : memref<1x8x32xf32, #tpu.memory_space<vmem>>, vector<1x8x32xf32>
      %512 = vector.shape_cast %511 : vector<1x8x32xf32> to vector<8x32xf32>
      %513 = vector.shape_cast %510 : vector<8x32xf32> to vector<1x8x32xf32>
      tpu.vector_store %arg7[%c0_155, %c0_156, %c0_157], %513 {strides = array<i32>} : memref<1x8x32xf32, #tpu.memory_space<vmem>>, vector<1x8x32xf32>,
    } else {
    }
    return
  }
  func.func @transform_0(%arg0: i32, %arg1: i32, %arg2: i32) -> (i32, i32, i32) {
    %c0_i32 = arith.constant 0 : i32
    %c0_i32_0 = arith.constant 0 : i32
    return %arg0, %arg1, %c0_i32 : i32, i32, i32
  }
  func.func @transform_1(%arg0: i32, %arg1: i32, %arg2: i32) -> (i32, i32, i32) {
    %c0_i32 = arith.constant 0 : i32
    %c0_i32_0 = arith.constant 0 : i32
    return %arg0, %c0_i32, %arg2 : i32, i32, i32
  }
  func.func @transform_2(%arg0: i32, %arg1: i32, %arg2: i32) -> (i32, i32, i32) {
    %c0_i32 = arith.constant 0 : i32
    %c0_i32_0 = arith.constant 0 : i32
    return %arg0, %arg2, %c0_i32 : i32, i32, i32
  }
  func.func @transform_3(%arg0: i32, %arg1: i32, %arg2: i32) -> i32 {
    %c0_i32 = arith.constant 0 : i32
    %c0_i32_0 = arith.constant 0 : i32
    return %c0_i32 : i32
  }
  func.func @transform_4(%arg0: i32, %arg1: i32, %arg2: i32) -> (i32, i32, i32) {
    %c0_i32 = arith.constant 0 : i32
    %c0_i32_0 = arith.constant 0 : i32
    return %arg0, %arg1, %c0_i32 : i32, i32, i32
  }
}

</mosaic_0001>

<bundles_post_ra>
// kernel: multi_head_attention.5
= control target key start
LH: loop header
LB: loop body
LE: loop exit
PB: predicated region body
PF: predicated region fallthrough
CT: control target
= control target key end

     0   :  { %s287_s1 = inlined_call_operand.vmem [shape: f32[128,128], index: 1, kind: input, shape index: {}]   ;;  %s288_s0 = inlined_call_operand.vmem [shape: f32[16,128], index: 0, kind: input, shape index: {}]   ;;  %s289_s2 = inlined_call_operand.vmem [shape: f32[16,128], index: 2, kind: output, shape index: {}]  }
   0x1   :  { %v21_v0 = vld [vmem:[%s287_s1] sm:$0xff]  ;;  %v22_v1 = vld [vmem:[%s287_s1 + $0x8] sm:$0xff]  ;;  %v23_v2 = vld [vmem:[%s287_s1 + $0x10] sm:$0xff] }
   0x2   :  { %v180_v3 = vpack.c.bf16 %v22_v1, %v21_v0  ;;  %v24_v4 = vld [vmem:[%s287_s1 + $0x18] sm:$0xff]  ;;  %v25_v6 = vld [vmem:[%s287_s1 + $0x20] sm:$0xff]  ;;  %v26_v7 = vld [vmem:[%s287_s1 + $0x28] sm:$0xff] }
   0x3   :  { %v184_v5 = vpack.c.bf16 %v24_v4, %v23_v2  ;;  %v188_v8 = vpack.c.bf16 %v26_v7, %v25_v6  ;;  %v19_v9 = vld [vmem:[%s288_s0] sm:$0xff]  ;;  %v27_v10 = vld [vmem:[%s287_s1 + $0x30] sm:$0xff]  ;;  %v28_v11 = vld [vmem:[%s287_s1 + $0x38] sm:$0xff] }
   0x4   :  { %181 = vmatprep.subr.bf16.mxu0 %v180_v3  ;;  %177 = vmatprep.mubr.f32.mxu0 %v19_v9  ;;  %v192_v12 = vpack.c.bf16 %v28_v11, %v27_v10  ;;  %v29_v13 = vld [vmem:[%s287_s1 + $0x40] sm:$0xff]  ;;  %v30_v14 = vld [vmem:[%s287_s1 + $0x48] sm:$0xff]  ;;  %v31_v16 = vld [vmem:[%s287_s1 + $0x50] sm:$0xff] }
   0x5   :  { %183 = vmatpush3.bf16.msra.mxu0 %v180_v3  ;;  %v196_v15 = vpack.c.bf16 %v30_v14, %v29_v13  ;;  %v32_v17 = vld [vmem:[%s287_s1 + $0x58] sm:$0xff]  ;;  %v33_v19 = vld [vmem:[%s287_s1 + $0x60] sm:$0xff]  ;;  %v34_v20 = vld [vmem:[%s287_s1 + $0x68] sm:$0xff] }
   0x6   :  { %185 = vmatprep.subr.bf16.mxu0 %v184_v5  ;;  %v200_v18 = vpack.c.bf16 %v32_v17, %v31_v16  ;;  %v204_v21 = vpack.c.bf16 %v34_v20, %v33_v19  ;;  %v35_v22 = vld [vmem:[%s287_s1 + $0x70] sm:$0xff]  ;;  %v36_v23 = vld [vmem:[%s287_s1 + $0x78] sm:$0xff]  ;;  %v20_v25 = vld [vmem:[%s288_s0 + $0x8] sm:$0xff] }
   0x7   :  { %v208_v24 = vpack.c.bf16 %v36_v23, %v35_v22 }
   0x9   :  { %187 = vmatpush3.bf16.msra.mxu0 %v184_v5 }
   0xa   :  { %189 = vmatprep.subr.bf16.mxu0 %v188_v8 }
   0xd   :  { %191 = vmatpush3.bf16.msra.mxu0 %v188_v8 }
   0xe   :  { %193 = vmatprep.subr.bf16.mxu0 %v192_v12 }
  0x11   :  { %195 = vmatpush3.bf16.msra.mxu0 %v192_v12 }
  0x12   :  { %197 = vmatprep.subr.bf16.mxu0 %v196_v15 }
  0x15   :  { %199 = vmatpush3.bf16.msra.mxu0 %v196_v15 }
  0x16   :  { %201 = vmatprep.subr.bf16.mxu0 %v200_v18 }
  0x19   :  { %203 = vmatpush3.bf16.msra.mxu0 %v200_v18 }
  0x1a   :  { %205 = vmatprep.subr.bf16.mxu0 %v204_v21 }
  0x1d   :  { %207 = vmatpush3.bf16.msra.mxu0 %v204_v21 }
  0x1e   :  { %209 = vmatprep.subr.bf16.mxu0 %v208_v24 }
  0x21   :  { %211 = vmatpush3.bf16.msra.mxu0 %v208_v24 }
  0x24   :  { %178 = vmatmul.mubr.f32.vlgmr.msra.gmra.mrb[0].mxu0 %v20_v25 }
  0xf7   :  { %v179_v26 = vpop.f32.mrb[0].mxu0 }
  0xf8   :  { %122 = vst [vmem:[%s289_s2 + $0x8] sm:$0xff] %v179_v26  ;;  %v103_v27 = vpop.f32.mrb[1].mxu0 }
  0xf9   :  { %121 = vst [vmem:[%s289_s2] sm:$0xff] %v103_v27 }

// kernel: multi_head_attention.8
= control target key start
LH: loop header
LB: loop body
LE: loop exit
PB: predicated region body
PF: predicated region fallthrough
CT: control target
= control target key end

     0   :  { %9 = vsyncpa [#allocation6], 0  ;;  %s2352_s15 = smov 0   ;;  %s2354_s16 = smov 0   ;;  %s2838_s0 = inlined_call_operand.vmem [shape: f32[2,8,32], index: 0, kind: input, shape index: {}]   ;;  %s2839_s1 = inlined_call_operand.vmem [shape: f32[2,32,128], index: 1, kind: input, shape index: {}]   ;;  %s2840_s2 = inlined_call_operand.vmem [shape: f32[2,128,32], index: 2, kind: input, shape index: {}]   ;;  %s2841_s3 = inlined_call_operand.vmem [shape: f32[8], index: 3, kind: input, shape index: {}]   ;;  %s2842_s4 = inlined_call_operand.vmem [shape: f32[2,8,32], index: 4, kind: output, shape index: {}]  }
   0x1   :  { %s2356_s17 = smov 0  }
   0x2 LB: > { %s1573_s18 = sadd.s32 4294967295, %s2282_s17   ;;  %s34_s19 = sadd.s32 1, %s2278_s16  ;;  %s2282_s17 = sphi %s2356_s17, %s15_s17   ;;  %s2278_s16 = sphi %s2354_s16, %s2846_s16   ;;  %s2274_s15 = sphi %s2352_s15, %s2845_s15  }
   0x3   : > { %p36_p0 = scmp.ge.s32.totalorder %s34_s19, 2  ;;  %p1575_p1 = scmp.ge.s32.totalorder %s2282_s17, 1 }
   0x4   : > { %p172_p2 = scmp.lt.s32.totalorder %s2282_s17, 3  ;;  %p2377_p4 = scmp.eq.s32.totalorder %s1573_s18, 0 }
   0x5   : > { %s2848_s19 = smov (%p36_p0, %s34_s19), 0  ;;  %s185_s24 = sshll.u32 %s2841_s3, 4  ;;  %s186_s24 = int_to_ptr.vmem [resolvable:$true] %s185_s24 }
   0x6   : > { %p2373_p3 = pnand %p1575_p1, %p172_p2  ;;  %s2241_s25 = scalar_lea.vmem %s186_s24, 16 }
   0x7   : > { %p2242_p7 = scmp.ne.s32.totalorder %s186_s24, %s2241_s25  ;;  %p2249_p11 = scmp.lt.s32.totalorder %s186_s24, %s186_s24 }
   0x8   : > { %p1926_p5 = pneg %p2373_p3  ;;  %p2250_p12 = scmp.lt.s32.totalorder %s2241_s25, %s2241_s25 }
   0xa   : > { %p1927_p6 = pnand %p2377_p4, %p1926_p5  ;;  %p2251_p13 = por %p2250_p12, %p2249_p11 }
   0xc   : > { %p2243_p8 = pneg %p1927_p6 }
   0xe   : > { %p2244_p9 = pnand %p2243_p8, %p2242_p7 }
  0x10   : > { %p2245_p10 = pneg %p2244_p9 }
  0x12   : > { %p2252_p0 = pnand %p2251_p13, %p2245_p10 }
  0x14   : > { %2255 = shalt.err (!%p2252_p0)
}
  0x15   : > { %s2284_s26 = smov [#allocation5]   ;;  %232 = sbr.rel (%p2373_p3) target bundleno = 980 (0x3d4), region = 36 }
  0x16   : > { %1929 = dma.vmem_to_smem (!%p1927_p6), %s186_s24, 16, %s2284_s26, [#allocation6]  }
  0x1c   : > { %2269 = dma.done.wait (%p2377_p4), [#allocation6], 16  }
  0x1d   : > { %2271 = vsyncadd (%p2377_p4), [#allocation6], 4294967280 }
  0x1e   : > { %238 = sfence }
  0x1f   : > { %p280_p1 = scmp.lt.s32.totalorder %s2274_s15, 1  ;;  %v2285_v0 = vmov 8   ;;  %v2286_v1 = vmov 0   ;;  %v2287_v3 = vmov 9   ;;  %v2288_v4 = vmov 1   ;;  %s574_s9 = sld [smem:[#allocation5]] }
  0x20   : > { %2001 = vset.pattern.permute.xlu1 %v2285_v0  ;;  %1999 = vset.pattern.permute.xlu0 %v2286_v1  ;;  %v2289_v5 = vmov 2   ;;  %v2290_v6 = vmov 10   ;;  %v2291_v7 = vmov 3   ;;  %v2292_v8 = vmov 4   ;;  %s1593_s10 = sld [smem:[#allocation5 + $0x1]]  ;;  %s2488_s11 = sld [smem:[#allocation5 + $0x2]] }
  0x21   : > { %s2850_s15 = smov (!%p280_p1, %s2274_s15), 1  ;;  %v2293_v9 = vmov 11   ;;  %v2294_v10 = vmov 13   ;;  %v2295_v11 = vmov 12   ;;  %v2296_v12 = vmov 7   ;;  %s1588_s12 = sld [smem:[#allocation5 + $0x3]] }
  0x22   : > { %s1580_s27 = sshll.u32 %s2850_s15, 3  ;;  %v2297_v13 = vmov 5   ;;  %v2298_v14 = vmov 17   ;;  %v2299_v15 = vmov 6   ;;  %v2300_v16 = vmov 18   ;;  %s1616_s5 = sshll.u32 %s2850_s15, 5 }
  0x23   : > { %s286_s30 = scalar_lea.vmem %s2838_s0, %s1580_s27  ;;  %v2301_v17 = vmov 14   ;;  %v2302_v18 = vmov 27   ;;  %v2303_v19 = vmov 15   ;;  %v2304_v20 = vmov 21   ;;  %s2450_s8 = scalar_lea.vmem %s2839_s1, %s1616_s5 }
  0x24   : > { %v2405_v2 = vld [vmem:[%s286_s30] sm:$0xff]  ;;  %v2305_v21 = vmov 16   ;;  %v2306_v22 = vmov 30   ;;  %v2307_v23 = vmov 24   ;;  %v2308_v24 = vmov 25   ;;  %v2470_v52 = vld [vmem:[%s2450_s8 + $0x8] sm:$0xff] }
  0x25   : > { %576 = vperm.xlu1 %2001, %v2405_v2   ;;  %360 = vperm.xlu0 %1999, %v2405_v2   ;;  %v2309_v25 = vmov 26   ;;  %v2310_v26 = vmov 19   ;;  %v2311_v27 = vmov 20   ;;  %v2312_v28 = vmov 28   ;;  %v2453_v39 = vld [vmem:[%s2450_s8] sm:$0xff]  ;;  %s1589_s13 = sld [smem:[#allocation5 + $0x4]] }
  0x26   : > { %v2313_v29 = vmov 29   ;;  %v2314_v30 = vmov 22   ;;  %v2315_v31 = vmov 23   ;;  %v2316_v32 = vmov 31   ;;  %s1590_s14 = sld [smem:[#allocation5 + $0x5]]  ;;  %s1591_s18 = sld [smem:[#allocation5 + $0x6]] }
  0x27   : > { %vm316_vm0 = vcmask 7168   ;;  %v2317_v33 = vmov -1e+30   ;;  %v351_v35 = vlaneseq  ;;  %s1592_s20 = sld [smem:[#allocation5 + $0x7]]  ;;  %s1617_s21 = sshll.u32 %s2850_s15, 7  ;;  %vm2321_vm2 = vmmov 0  }
  0x28   : > { %317 = vst.msk [vmem:[#allocation2] sm:$0xff] %vm316_vm0, %v2317_v33  ;;  %318 = vst.msk [vmem:[#allocation2 + $0x8] sm:$0xff] %vm316_vm0, %v2317_v33  ;;  %s2577_s24 = scalar_lea.vmem %s2840_s2, %s1617_s21  ;;  %s2319_s25 = smov 120   ;;  %vm325_vm3 = vcmask 64512   ;;  %vm1441_vm4 = vcmask 130048   ;;  %vm1443_vm5 = vcmask 195584  }
  0x29   : > { %2002 = vset.pattern.permute.xlu1 %v2287_v3  ;;  %2000 = vset.pattern.permute.xlu0 %v2288_v4  ;;  %319 = vst.msk [vmem:[#allocation2 + $0x10] sm:$0xff] %vm316_vm0, %v2317_v33  ;;  %320 = vst.msk [vmem:[#allocation2 + $0x18] sm:$0xff] %vm316_vm0, %v2317_v33  ;;  %v364_v36 = vshrl.u32 %v351_v35, 7  ;;  %s2322_s26 = smov 112   ;;  %s2323_s28 = smov 104   ;;  %vm1445_vm6 = vcmask 261120  }
  0x2a   : > { %590 = vperm.xlu1 %2002, %v2405_v2   ;;  %374 = vperm.xlu0 %2000, %v2405_v2   ;;  %s2324_s29 = smov 8   ;;  %s2325_s30 = smov 16  }
  0x2b   : > { %v2455_v40 = vsub.s32 0, %v364_v36  ;;  %v2457_v41 = vsub.s32 1, %v364_v36  ;;  %v2463_v46 = vsub.s32 2, %v364_v36  ;;  %v2465_v47 = vsub.s32 3, %v364_v36  ;;  %s2326_s5 = smov 24  }
  0x2c   : > { %v2474_v55 = vsub.s32 4, %v364_v36  ;;  %v2486_v4 = vsub.s32 5, %v364_v36 }
  0x2d   : > { %v366_v43 = vrot.slane %v2453_v39, %v2455_v40  ;;  %v380_v45 = vrot.slane %v2453_v39, %v2457_v41  ;;  %v394_v51 = vrot.slane %v2453_v39, %v2463_v46  ;;  %v408_v54 = vrot.slane %v2453_v39, %v2465_v47 }
  0x2e   : > { %2003 = vset.pattern.permute.xlu1 %v2289_v5  ;;  %2004 = vset.pattern.permute.xlu0 %v2290_v6  ;;  %v582_v56 = vrot.slane %v2470_v52, %v2455_v40  ;;  %v596_v59 = vrot.slane %v2470_v52, %v2457_v41  ;;  %v422_v62 = vrot.slane %v2453_v39, %v2474_v55 }
  0x2f   : > { %388 = vperm.xlu1 %2003, %v2405_v2   ;;  %604 = vperm.xlu0 %2004, %v2405_v2   ;;  %v610_v63 = vrot.slane %v2470_v52, %v2463_v46 }
  0x33   : > { %2005 = vset.pattern.permute.xlu1 %v2291_v7  ;;  %2007 = vset.pattern.permute.xlu0 %v2292_v8  ;;  %v624_v7 = vrot.slane %v2470_v52, %v2465_v47 }
  0x34   : > { %402 = vperm.xlu1 %2005, %v2405_v2   ;;  %416 = vperm.xlu0 %2007, %v2405_v2  }
  0x38   : > { %2006 = vset.pattern.permute.xlu1 %v2293_v9  ;;  %2010 = vset.pattern.permute.xlu0 %v2294_v10  ;;  %v638_v9 = vrot.slane %v2470_v52, %v2474_v55  ;;  %v436_v10 = vrot.slane %v2453_v39, %v2486_v4 }
  0x39   : > { %618 = vperm.xlu1 %2006, %v2405_v2   ;;  %646 = vperm.xlu0 %2010, %v2405_v2  }
  0x3d   : > { %2008 = vset.pattern.permute.xlu1 %v2295_v11  ;;  %2013 = vset.pattern.permute.xlu0 %v2296_v12  ;;  %v2496_v11 = vsub.s32 6, %v364_v36 }
  0x3e   : > { %632 = vperm.xlu1 %2008, %v2405_v2   ;;  %458 = vperm.xlu0 %2013, %v2405_v2  }
  0x42   : > { %2009 = vset.pattern.permute.xlu1 %v2297_v13  ;;  %2016 = vset.pattern.permute.xlu0 %v2298_v14 }
  0x43   : > { %430 = vperm.xlu1 %2009, %v2405_v2   ;;  %871 = vperm.xlu0 %2016, %v2405_v2  }
  0x47   : > { %2011 = vset.pattern.permute.xlu1 %v2299_v15  ;;  %2019 = vset.pattern.permute.xlu0 %v2300_v16 }
  0x48   : > { %444 = vperm.xlu1 %2011, %v2405_v2   ;;  %885 = vperm.xlu0 %2019, %v2405_v2  }
  0x4c   : > { %2012 = vset.pattern.permute.xlu1 %v2301_v17  ;;  %2022 = vset.pattern.permute.xlu0 %v2302_v18  ;;  %v2500_v18 = vstv %s574_s9 }
  0x4d   : > { %660 = vperm.xlu1 %2012, %v2405_v2   ;;  %1164 = vperm.xlu0 %2022, %v2405_v2  }
  0x51   : > { %2014 = vset.pattern.permute.xlu1 %v2303_v19  ;;  %2025 = vset.pattern.permute.xlu0 %v2304_v20 }
  0x52   : > { %674 = vperm.xlu1 %2014, %v2405_v2   ;;  %927 = vperm.xlu0 %2025, %v2405_v2  }
  0x56   : > { %2015 = vset.pattern.permute.xlu1 %v2305_v21  ;;  %2028 = vset.pattern.permute.xlu0 %v2306_v22  ;;  %v2502_v21 = vstv %s1593_s10  ;;  %v652_v22 = vrot.slane %v2470_v52, %v2486_v4 }
  0x57   : > { %857 = vperm.xlu1 %2015, %v2405_v2   ;;  %1206 = vperm.xlu0 %2028, %v2405_v2  }
  0x5b   : > { %2017 = vset.pattern.permute.xlu1 %v2307_v23  ;;  %2047 = vset.pattern.permute.xlu0 %v2286_v1  ;;  %v450_v23 = vrot.slane %v2453_v39, %v2496_v11 }
  0x5c   : > { %1122 = vperm.xlu1 %2017, %v2405_v2  }
  0x60   : > { %2018 = vset.pattern.permute.xlu1 %v2308_v24 }
  0x61   : > { %1136 = vperm.xlu1 %2018, %v2405_v2  }
  0x65   : > { %2020 = vset.pattern.permute.xlu1 %v2309_v25 }
  0x66   : > { %1150 = vperm.xlu1 %2020, %v2405_v2  }
  0x6a   : > { %2021 = vset.pattern.permute.xlu1 %v2310_v26 }
  0x6b   : > { %899 = vperm.xlu1 %2021, %v2405_v2  }
  0x6f   : > { %2023 = vset.pattern.permute.xlu1 %v2311_v27 }
  0x70   : > { %913 = vperm.xlu1 %2023, %v2405_v2  }
  0x74   : > { %2024 = vset.pattern.permute.xlu1 %v2312_v28  ;;  %v2511_v28 = vstv %s2488_s11 }
  0x75   : > { %1178 = vperm.xlu1 %2024, %v2405_v2  }
  0x79   : > { %2026 = vset.pattern.permute.xlu1 %v2313_v29 }
  0x7a   : > { %1192 = vperm.xlu1 %2026, %v2405_v2  }
  0x7e   : > { %2027 = vset.pattern.permute.xlu1 %v2314_v30 }
  0x7f   : > { %941 = vperm.xlu1 %2027, %v2405_v2  }
  0x83   : > { %2029 = vset.pattern.permute.xlu1 %v2315_v31  ;;  %v2513_v31 = vstv %s1588_s12 }
  0x84   : > { %955 = vperm.xlu1 %2029, %v2405_v2  }
  0x88   : > { %2030 = vset.pattern.permute.xlu1 %v2316_v32 }
  0x89   : > { %1220 = vperm.xlu1 %2030, %v2405_v2  }
  0x8d   : > { %2046 = vset.pattern.permute.xlu1 %v2286_v1  ;;  %v2484_v1 = vsub.s32 7, %v364_v36 }
  0x8f   : > { %v464_v12 = vrot.slane %v2453_v39, %v2484_v1 }
  0xa4   : > { %v577_v34 = vpop.permute.xlu1 %576  ;;  %v361_v37 = vpop.permute.xlu0 %360 }
  0xa5   : > { %v367_v48 = vadd.f32 %v366_v43, %v361_v37  ;;  %v583_v0 = vadd.f32 %v582_v56, %v577_v34  ;;  %v666_v37 = vrot.slane %v2470_v52, %v2496_v11 }
  0xa7   : > { %2153 = vtanh.f32 %v367_v48 }
  0xa9   : > { %v591_v38 = vpop.permute.xlu1 %590  ;;  %v375_v44 = vpop.permute.xlu0 %374 }
  0xaa   : > { %v381_v50 = vadd.f32 %v380_v45, %v375_v44  ;;  %v597_v2 = vadd.f32 %v596_v59, %v591_v38  ;;  %v2519_v45 = vstv %s1589_s13 }
  0xac   : > { %2155 = vtanh.f32 %v381_v50 }
  0xae   : > { %v389_v42 = vpop.permute.xlu1 %388  ;;  %v605_v53 = vpop.permute.xlu0 %604 }
  0xaf   : > { %v395_v57 = vadd.f32 %v394_v51, %v389_v42  ;;  %v611_v8 = vadd.f32 %v610_v63, %v605_v53  ;;  %v680_v53 = vrot.slane %v2470_v52, %v2484_v1  ;;  %v2530_v52 = vstv %s1591_s18 }
  0xb1   : > { %2157 = vtanh.f32 %v395_v57  ;;  %v2154_v13 = vpop.eup %2153 }
  0xb2   : > { %v370_v25 = vmul.f32 %v2154_v13, %v2500_v18 }
  0xb3   : > { %v403_v49 = vpop.permute.xlu1 %402  ;;  %v417_v60 = vpop.permute.xlu0 %416 }
  0xb4   : > { %v409_v61 = vadd.f32 %v408_v54, %v403_v49  ;;  %v423_v6 = vadd.f32 %v422_v62, %v417_v60 }
  0xb6   : > { %2159 = vtanh.f32 %v409_v61  ;;  %v2156_v15 = vpop.eup %2155  ;;  %v2527_v61 = vstv %s1590_s14 }
  0xb7   : > { %2161 = vtanh.f32 %v583_v0  ;;  %v384_v26 = vmul.f32 %v2156_v15, %v2502_v21 }
  0xb8   : > { %v619_v58 = vpop.permute.xlu1 %618  ;;  %v647_v5 = vpop.permute.xlu0 %646  ;;  %2163 = vtanh.f32 %v597_v2 }
  0xb9   : > { %2165 = vtanh.f32 %v423_v6  ;;  %v625_v16 = vadd.f32 %v624_v7, %v619_v58  ;;  %v653_v32 = vadd.f32 %v652_v22, %v647_v5  ;;  %v385_v34 = vadd.f32 %v384_v26, %v370_v25  ;;  %v2542_v22 = vld [vmem:[%s2450_s8 + $0x18] sm:$0xff] }
  0xba   : > { %2167 = vtanh.f32 %v611_v8  ;;  %v2532_v6 = vstv %s1592_s20 }
  0xbb   : > { %v2158_v27 = vpop.eup %2157 }
  0xbc   : > { %v398_v36 = vmul.f32 %v2158_v27, %v2511_v28 }
  0xbd   : > { %v633_v3 = vpop.permute.xlu1 %632  ;;  %v459_v14 = vpop.permute.xlu0 %458 }
  0xbe   : > { %v639_v19 = vadd.f32 %v638_v9, %v633_v3  ;;  %v465_v24 = vadd.f32 %v464_v12, %v459_v14  ;;  %v399_v50 = vadd.f32 %v398_v36, %v385_v34 }
  0xc0   : > { %v2160_v30 = vpop.eup %2159 }
  0xc1   : > { %v2162_v38 = vpop.eup %2161  ;;  %v412_v42 = vmul.f32 %v2160_v30, %v2513_v31 }
  0xc2   : > { %v431_v17 = vpop.permute.xlu1 %430  ;;  %v2164_v39 = vpop.eup %2163  ;;  %v586_v59 = vmul.f32 %v2162_v38, %v2500_v18 }
  0xc3   : > { %v437_v20 = vadd.f32 %v436_v10, %v431_v17  ;;  %v2166_v43 = vpop.eup %2165  ;;  %v600_v51 = vmul.f32 %v2164_v39, %v2502_v21  ;;  %v413_v56 = vadd.f32 %v412_v42, %v399_v50  ;;  %v2536_v10 = vand.u32 127, %v351_v35  ;;  %v872_v13 = vpop.permute.xlu0 %871 }
  0xc4   : > { %v2168_v48 = vpop.eup %2167  ;;  %v426_v57 = vmul.f32 %v2166_v43, %v2519_v45  ;;  %v1128_v35 = vrot.slane %v2542_v22, %v2455_v40  ;;  %v1170_v42 = vrot.slane %v2542_v22, %v2465_v47 }
  0xc5   : > { %2169 = vtanh.f32 %v437_v20  ;;  %v614_v60 = vmul.f32 %v2168_v48, %v2511_v28  ;;  %v601_v3 = vadd.f32 %v600_v51, %v586_v59  ;;  %vm356_vm1 = vcmp.lt.s32.totalorder %v2536_v10, 8 }
  0xc6   : > { %2171 = vtanh.f32 %v625_v16  ;;  %v427_v8 = vadd.f32 %v426_v57, %v413_v56 }
  0xc7   : > { %2173 = vtanh.f32 %v639_v19  ;;  %v445_v29 = vpop.permute.xlu1 %444  ;;  %v615_v12 = vadd.f32 %v614_v60, %v601_v3  ;;  %v886_v30 = vpop.permute.xlu0 %885 }
  0xc8   : > { %v451_v33 = vadd.f32 %v450_v23, %v445_v29  ;;  %2175 = vtanh.f32 %v465_v24 }
  0xca   : > { %2177 = vtanh.f32 %v451_v33 }
  0xcb   : > { %2179 = vtanh.f32 %v653_v32 }
  0xcc   : > { %v661_v44 = vpop.permute.xlu1 %660  ;;  %v1165_v48 = vpop.permute.xlu0 %1164 }
  0xcd   : > { %v667_v49 = vadd.f32 %v666_v37, %v661_v44  ;;  %v1142_v37 = vrot.slane %v2542_v22, %v2457_v41 }
  0xcf   : > { %v2170_v54 = vpop.eup %2169  ;;  %2181 = vtanh.f32 %v667_v49 }
  0xd0   : > { %v2172_v58 = vpop.eup %2171  ;;  %v440_v0 = vmul.f32 %v2170_v54, %v2527_v61  ;;  %v1171_v54 = vadd.f32 %v1170_v42, %v1165_v48  ;;  %v1198_v42 = vrot.slane %v2542_v22, %v2486_v4 }
  0xd1   : > { %v2174_v62 = vpop.eup %2173  ;;  %v675_v63 = vpop.permute.xlu1 %674  ;;  %v628_v7 = vmul.f32 %v2172_v58, %v2513_v31  ;;  %v2567_v58 = vld [vmem:[%s2450_s8 + $0x10] sm:$0xff]  ;;  %s311_s8 = scalar_lea.vmem %s2842_s4, %s1580_s27 }
  0xd2   : > { %v2176_v2 = vpop.eup %2175  ;;  %v681_v5 = vadd.f32 %v680_v53, %v675_v63  ;;  %v441_v14 = vadd.f32 %v440_v0, %v427_v8  ;;  %v642_v17 = vmul.f32 %v2174_v62, %v2519_v45  ;;  %v1156_v53 = vrot.slane %v2542_v22, %v2463_v46 }
  0xd3   : > { %v468_v16 = vmul.f32 %v2176_v2, %v2532_v6  ;;  %v629_v24 = vadd.f32 %v628_v7, %v615_v12  ;;  %v877_v60 = vrot.slane %v2567_v58, %v2457_v41  ;;  %v863_v62 = vrot.slane %v2567_v58, %v2455_v40  ;;  %v928_v40 = vpop.permute.xlu0 %927  ;;  %v2587_v12 = vld [vmem:[%s2577_s24 + $0x8] sm:$0xff] }
  0xd4   : > { %v2178_v9 = vpop.eup %2177  ;;  %2183 = vtanh.f32 %v681_v5  ;;  %v891_v7 = vrot.slane %v2567_v58, %v2463_v46  ;;  %v1184_v46 = vrot.slane %v2542_v22, %v2474_v55 }
  0xd5   : > { %v454_v15 = vmul.f32 %v2178_v9, %v2530_v52  ;;  %v2180_v19 = vpop.eup %2179  ;;  %v643_v27 = vadd.f32 %v642_v17, %v629_v24  ;;  %v878_v3 = vadd.f32 %v877_v60, %v872_v13  ;;  %v2584_v9 = vld [vmem:[%s2577_s24] sm:$0xff]  ;;  %v905_v13 = vrot.slane %v2567_v58, %v2465_v47  ;;  %v2605_v47 = vld [vmem:[%s2577_s24 + $0x28] sm:$0xff] }
  0xd6   : > { %v858_v20 = vpop.permute.xlu1 %857  ;;  %v656_v29 = vmul.f32 %v2180_v19, %v2527_v61  ;;  %v1212_v17 = vrot.slane %v2542_v22, %v2496_v11  ;;  %v2597_v19 = vpack.i.bf16 %v2587_v12, %v2584_v9  ;;  %v919_v24 = vrot.slane %v2567_v58, %v2474_v55 }
  0xd7   : > { %v455_v23 = vadd.f32 %v454_v15, %v441_v14  ;;  %v864_v5 = vadd.f32 %v863_v62, %v858_v20  ;;  %v961_v62 = vrot.slane %v2567_v58, %v2484_v1 }
  0xd8   : > { %v657_v38 = vadd.f32 %v656_v29, %v643_v27 }
  0xd9   : > { %v2182_v25 = vpop.eup %2181  ;;  %v469_v26 = vadd.f32 %v468_v16, %v455_v23  ;;  %v892_v23 = vadd.f32 %v891_v7, %v886_v30 }
  0xda   : > { %v670_v34 = vmul.f32 %v2182_v25, %v2530_v52  ;;  %v1207_v25 = vpop.permute.xlu0 %1206 }
  0xdb   : > { %v1123_v32 = vpop.permute.xlu1 %1122  ;;  %v2550_v33 = vsel %vm356_vm1, %v469_v26, -1e+30  ;;  %v1213_v30 = vadd.f32 %v1212_v17, %v1207_v25 }
  0xdc   : > { %472 = vmax.xlane.f32.xlu0 %v2550_v33  ;;  %v1129_v36 = vadd.f32 %v1128_v35, %v1123_v32  ;;  %v671_v43 = vadd.f32 %v670_v34, %v657_v38  ;;  %v2602_v35 = vld [vmem:[%s2577_s24 + $0x20] sm:$0xff]  ;;  %v2318_v34 = vmov 0.0  }
  0xdd   : > { %321 = vst.msk [vmem:[#allocation3] sm:$0xff] %vm316_vm0, %v2318_v34  ;;  %322 = vst.msk [vmem:[#allocation3 + $0x8] sm:$0xff] %vm316_vm0, %v2318_v34  ;;  %1718 = vmatprep.mubr.msk.f32.mxu0 %vm2321_vm2, %v2318_v34  ;;  %1753 = vmatprep.mubr.msk.f32.mxu1 %vm2321_vm2, %v2318_v34 }
  0xde   : > { %v2184_v39 = vpop.eup %2183  ;;  %2185 = vtanh.f32 %v1129_v36  ;;  %323 = vst.msk [vmem:[#allocation3 + $0x10] sm:$0xff] %vm316_vm0, %v2318_v34  ;;  %324 = vst.msk [vmem:[#allocation3 + $0x18] sm:$0xff] %vm316_vm0, %v2318_v34 }
  0xdf   : > { %v684_v44 = vmul.f32 %v2184_v39, %v2532_v6  ;;  %v933_v39 = vrot.slane %v2567_v58, %v2486_v4  ;;  %327 = vst.msk [vmem:[#allocation4 + $0x8] sm:$0xff] %vm325_vm3, %v2318_v34  ;;  %326 = vst.msk [vmem:[#allocation4] sm:$0xff] %vm325_vm3, %v2318_v34 }
  0xe0   : > { %v1137_v49 = vpop.permute.xlu1 %1136  ;;  %328 = vst.msk [vmem:[#allocation4 + $0x10] sm:$0xff] %vm325_vm3, %v2318_v34  ;;  %329 = vst.msk [vmem:[#allocation4 + $0x18] sm:$0xff] %vm325_vm3, %v2318_v34 }
  0xe1   : > { %v1143_v50 = vadd.f32 %v1142_v37, %v1137_v49  ;;  %v685_v51 = vadd.f32 %v684_v44, %v671_v43  ;;  %v2621_v37 = vpack.i.bf16 %v2605_v47, %v2602_v35  ;;  %v934_v48 = vadd.f32 %v933_v39, %v928_v40  ;;  %v338_v39 = vld [vmem:[%s2577_s24 + $0x18] sm:$0xff] }
  0xe2   : > { %v1226_v40 = vrot.slane %v2542_v22, %v2484_v1 }
  0xe3   : > { %2187 = vtanh.f32 %v1143_v50  ;;  %v2563_v56 = vsel %vm356_vm1, %v685_v51, -1e+30  ;;  %v947_v51 = vrot.slane %v2567_v58, %v2496_v11 }
  0xe4   : > { %689 = vmax.xlane.f32.xlu1 %v2563_v56  ;;  %2189 = vtanh.f32 %v1171_v54 }
  0xe5   : > { %v1151_v57 = vpop.permute.xlu1 %1150 }
  0xe6   : > { %v1157_v59 = vadd.f32 %v1156_v53, %v1151_v57 }
  0xe8   : > { %2191 = vtanh.f32 %v1157_v59  ;;  %v2186_v0 = vpop.eup %2185 }
  0xe9   : > { %v1132_v41 = vmul.f32 %v2186_v0, %v2500_v18  ;;  %2193 = vtanh.f32 %v878_v3 }
  0xea   : > { %v900_v63 = vpop.permute.xlu1 %899  ;;  %2195 = vtanh.f32 %v864_v5 }
  0xeb   : > { %v906_v29 = vadd.f32 %v905_v13, %v900_v63  ;;  %2197 = vtanh.f32 %v892_v23 }
  0xed   : > { %v2188_v2 = vpop.eup %2187 }
  0xee   : > { %v1146_v8 = vmul.f32 %v2188_v2, %v2502_v21  ;;  %v2190_v15 = vpop.eup %2189 }
  0xef   : > { %v914_v14 = vpop.permute.xlu1 %913  ;;  %v1174_v27 = vmul.f32 %v2190_v15, %v2513_v31 }
  0xf0   : > { %v1147_v16 = vadd.f32 %v1146_v8, %v1132_v41  ;;  %v920_v38 = vadd.f32 %v919_v24, %v914_v14 }
  0xf2   : > { %v2192_v20 = vpop.eup %2191 }
  0xf3   : > { %v1160_v26 = vmul.f32 %v2192_v20, %v2511_v28  ;;  %v2194_v50 = vpop.eup %2193 }
  0xf4   : > { %v1179_v32 = vpop.permute.xlu1 %1178  ;;  %v2196_v53 = vpop.eup %2195  ;;  %v881_v4 = vmul.f32 %v2194_v50, %v2502_v21 }
  0xf5   : > { %v1185_v55 = vadd.f32 %v1184_v46, %v1179_v32  ;;  %v1161_v36 = vadd.f32 %v1160_v26, %v1147_v16  ;;  %2032 = vrot.lane.b32.xlu1 %v2597_v19, %s2319_s25  ;;  %v867_v57 = vmul.f32 %v2196_v53, %v2500_v18  ;;  %v2198_v60 = vpop.eup %2197 }
  0xf6   : > { %v895_v5 = vmul.f32 %v2198_v60, %v2511_v28  ;;  %v2690_v60 = vld [vmem:[#allocation2 + $0x8] sm:$0xff] }
  0xf7   : > { %2199 = vtanh.f32 %v1185_v55  ;;  %v1175_v43 = vadd.f32 %v1174_v27, %v1161_v36  ;;  %v882_v11 = vadd.f32 %v881_v4, %v867_v57  ;;  %v345_v57 = vld [vmem:[%s2577_s24 + $0x50] sm:$0xff] }
  0xf8   : > { %2201 = vtanh.f32 %v906_v29 }
  0xf9   : > { %v1193_v44 = vpop.permute.xlu1 %1192  ;;  %2203 = vtanh.f32 %v1213_v30  ;;  %2042 = vrot.lane.b32.xlu1 %v2621_v37, %s2319_s25  ;;  %v896_v58 = vadd.f32 %v895_v5, %v882_v11 }
  0xfa   : > { %2205 = vtanh.f32 %v920_v38  ;;  %v1199_v49 = vadd.f32 %v1198_v42, %v1193_v44  ;;  %v1833_v44 = vpack.c.bf16 %v2605_v47, %v2602_v35  ;;  %v343_v35 = vld [vmem:[%s2577_s24 + $0x40] sm:$0xff]  ;;  %v344_v47 = vld [vmem:[%s2577_s24 + $0x48] sm:$0xff] }
  0xfb   : > { %v1839_v53 = vpack.c.bf16 %v344_v47, %v343_v35 }
  0xfc   : > { %2207 = vtanh.f32 %v1199_v49  ;;  %v342_v49 = vld [vmem:[%s2577_s24 + $0x38] sm:$0xff] }
  0xfd   : > { %2209 = vtanh.f32 %v934_v48  ;;  %v341_v48 = vld [vmem:[%s2577_s24 + $0x30] sm:$0xff] }
  0xfe   : > { %v942_v54 = vpop.permute.xlu1 %941  ;;  %v2048_v4 = vpack.i.bf16 %v342_v49, %v341_v48 }
  0xff   : > { %v948_v59 = vadd.f32 %v947_v51, %v942_v54 }
 0x101   : > { %v2200_v63 = vpop.eup %2199  ;;  %2211 = vtanh.f32 %v948_v59  ;;  %v346_v59 = vld [vmem:[%s2577_s24 + $0x58] sm:$0xff] }
 0x102   : > { %v2202_v0 = vpop.eup %2201  ;;  %v1188_v2 = vmul.f32 %v2200_v63, %v2519_v45  ;;  %v2693_v63 = vpack.i.bf16 %v344_v47, %v343_v35 }
 0x103   : > { %v2204_v3 = vpop.eup %2203  ;;  %v956_v7 = vpop.permute.xlu1 %955  ;;  %v909_v18 = vmul.f32 %v2202_v0, %v2513_v31 }
 0x104   : > { %v2206_v41 = vpop.eup %2205  ;;  %v962_v8 = vadd.f32 %v961_v62, %v956_v7  ;;  %v1189_v21 = vadd.f32 %v1188_v2, %v1175_v43  ;;  %v1216_v13 = vmul.f32 %v2204_v3, %v2530_v52  ;;  %v1827_v43 = vpack.c.bf16 %v2587_v12, %v2584_v9  ;;  %v2675_v12 = vld [vmem:[#allocation2] sm:$0xff]  ;;  %v348_v3 = vld [vmem:[%s2577_s24 + $0x68] sm:$0xff] }
 0x105   : > { %v923_v15 = vmul.f32 %v2206_v41, %v2519_v45  ;;  %v910_v20 = vadd.f32 %v909_v18, %v896_v58  ;;  %v1836_v9 = vpack.c.bf16 %v342_v49, %v341_v48  ;;  %v1842_v62 = vpack.c.bf16 %v346_v59, %v345_v57  ;;  %v347_v2 = vld [vmem:[%s2577_s24 + $0x60] sm:$0xff] }
 0x106   : > { %v2208_v14 = vpop.eup %2207  ;;  %2213 = vtanh.f32 %v962_v8  ;;  %v1845_v5 = vpack.c.bf16 %v348_v3, %v347_v2  ;;  %v2058_v7 = vpack.i.bf16 %v346_v59, %v345_v57  ;;  %v2706_v41 = vpack.i.bf16 %v348_v3, %v347_v2  ;;  %v349_v8 = vld [vmem:[%s2577_s24 + $0x70] sm:$0xff] }
 0x107   : > { %v1202_v16 = vmul.f32 %v2208_v14, %v2527_v61  ;;  %v2210_v46 = vpop.eup %2209  ;;  %v924_v31 = vadd.f32 %v923_v15, %v910_v20 }
 0x108   : > { %v1221_v28 = vpop.permute.xlu1 %1220  ;;  %v937_v1 = vmul.f32 %v2210_v46, %v2527_v61 }
 0x109   : > { %v1227_v17 = vadd.f32 %v1226_v40, %v1221_v28  ;;  %v1203_v23 = vadd.f32 %v1202_v16, %v1189_v21  ;;  %v350_v21 = vld [vmem:[%s2577_s24 + $0x78] sm:$0xff] }
 0x10a   : > { %v938_v45 = vadd.f32 %v937_v1, %v924_v31  ;;  %v1848_v58 = vpack.c.bf16 %v350_v21, %v349_v8  ;;  %v2068_v15 = vpack.i.bf16 %v350_v21, %v349_v8 }
 0x10b   : > { %v2212_v24 = vpop.eup %2211  ;;  %2215 = vtanh.f32 %v1227_v17  ;;  %v1217_v22 = vadd.f32 %v1216_v13, %v1203_v23  ;;  %v2733_v13 = vld [vmem:[#allocation2 + $0x10] sm:$0xff] }
 0x10c   : > { %v951_v25 = vmul.f32 %v2212_v24, %v2530_v52  ;;  %v337_v52 = vld [vmem:[%s2577_s24 + $0x10] sm:$0xff] }
 0x10d   : > { %v2659_v42 = vpack.i.bf16 %v338_v39, %v337_v52  ;;  %v1830_v10 = vpack.c.bf16 %v338_v39, %v337_v52 }
 0x10e   : > { %v952_v27 = vadd.f32 %v951_v25, %v938_v45 }
 0x110   : > { %v2214_v26 = vpop.eup %2213 }
 0x111   : > { %v965_v29 = vmul.f32 %v2214_v26, %v2532_v6 }
 0x113   : > { %v966_v32 = vadd.f32 %v965_v29, %v952_v27 }
 0x115   : > { %v2216_v55 = vpop.eup %2215  ;;  %v2648_v30 = vsel %vm356_vm1, %v966_v32, -1e+30 }
 0x116   : > { %970 = vmax.xlane.f32.xlu0 %v2648_v30  ;;  %v1230_v36 = vmul.f32 %v2216_v55, %v2532_v6  ;;  %v2320_v6 = vmov 0.0|0.0  }
 0x117   : > { %1826 = vmatprep.subr.bf16.mxu0 %v2320_v6  ;;  %1850 = vmatprep.subr.bf16.mxu1 %v2320_v6 }
 0x118   : > { %v1231_v61 = vadd.f32 %v1230_v36, %v1217_v22  ;;  %1828 = vmatpush3.bf16.msra.mxu0 %v1827_v43 }
 0x119   : > { %1829 = vmatprep.subr.bf16.mxu0 %v2320_v6 }
 0x11a   : > { %v2654_v38 = vsel %vm356_vm1, %v1231_v61, -1e+30 }
 0x11b   : > { %1235 = vmax.xlane.f32.xlu0 %v2654_v38 }
 0x11c   : > { %1831 = vmatpush3.bf16.msra.mxu0 %v1830_v10 }
 0x11d   : > { %1832 = vmatprep.subr.bf16.mxu0 %v2320_v6 }
 0x120   : > { %1834 = vmatpush3.bf16.msra.mxu0 %v1833_v44 }
 0x121   : > { %1835 = vmatprep.subr.bf16.mxu0 %v2320_v6 }
 0x124   : > { %1837 = vmatpush3.bf16.msra.mxu0 %v1836_v9 }
 0x125   : > { %1838 = vmatprep.subr.bf16.mxu0 %v2320_v6 }
 0x128   : > { %1840 = vmatpush3.bf16.msra.mxu0 %v1839_v53 }
 0x129   : > { %1841 = vmatprep.subr.bf16.mxu0 %v2320_v6 }
 0x12c   : > { %1843 = vmatpush3.bf16.msra.mxu0 %v1842_v62 }
 0x12d   : > { %1844 = vmatprep.subr.bf16.mxu0 %v2320_v6 }
 0x130   : > { %1846 = vmatpush3.bf16.msra.mxu0 %v1845_v5 }
 0x131   : > { %2037 = vrot.lane.b32.xlu0 %v2659_v42, %s2319_s25  ;;  %1847 = vmatprep.subr.bf16.mxu0 %v2320_v6 }
 0x134   : > { %1849 = vmatpush3.bf16.msra.mxu0 %v1848_v58 }
 0x135   : > { %1874 = vmatprep.subr.bf16.mxu0 %v2320_v6 }
 0x169   : > { %v473_v50 = vpop.xlane.xlu0 %472 }
 0x16a   : > { %v2678_v51 = vmax.f32 %v2675_v12, %v473_v50 }
 0x16c   : > { %v475_v54 = vsub.f32 %v2675_v12, %v2678_v51  ;;  %573 = vst.msk [vmem:[#allocation2] sm:$0xff] %vm316_vm0, %v2678_v51  ;;  %480 = vperm.xlu1 %2046, %v2678_v51   ;;  %v704_v12 = vld [vmem:[#allocation3 + $0x8] sm:$0xff] }
 0x170   : > { %2049 = vrot.lane.b32.xlu1 %v2048_v4, %s2319_s25 }
 0x171   : > { %v690_v0 = vpop.xlane.xlu1 %689 }
 0x172   : > { %v2698_v11 = vmax.f32 %v2690_v60, %v690_v0 }
 0x174   : > { %854 = vst.msk [vmem:[#allocation2 + $0x8] sm:$0xff] %vm316_vm0, %v2698_v11  ;;  %697 = vperm.xlu0 %2047, %v2698_v11   ;;  %2054 = vrot.lane.b32.xlu1 %v2693_v63, %s2319_s25  ;;  %v692_v24 = vsub.f32 %v2690_v60, %v2698_v11 }
 0x175   : > { %v2033_v18 = vpop.permute.xlu1 %2032 }
 0x176   : > { %v2035_v40 = vunpack.i.h.bf16 %v2033_v18  ;;  %v2034_v14 = vunpack.i.l.bf16 %v2033_v18  ;;  %v693_v29 = vmul.f32 1.442695, %v692_v24 }
 0x178   : > { %2059 = vrot.lane.b32.xlu0 %v2058_v7, %s2319_s25  ;;  %2064 = vrot.lane.b32.xlu1 %v2706_v41, %s2319_s25  ;;  %v1851_v16 = vpack.c.bf16 %v2035_v40, %v2034_v14  ;;  %2217 = vpow2.f32 %v693_v29 }
 0x179   : > { %v2043_v31 = vpop.permute.xlu1 %2042 }
 0x17a   : > { %1852 = vmatpush3.bf16.msra.mxu1 %v1851_v16  ;;  %v2045_v22 = vunpack.i.h.bf16 %v2043_v31  ;;  %v2044_v25 = vunpack.i.l.bf16 %v2043_v31 }
 0x17b   : > { %1853 = vmatprep.subr.bf16.mxu1 %v2320_v6 }
 0x17c   : > { %2069 = vrot.lane.b32.xlu0 %v2068_v15, %s2319_s25  ;;  %2074 = vrot.lane.b32.xlu1 %v2597_v19, %s2322_s26  ;;  %v1857_v32 = vpack.c.bf16 %v2045_v22, %v2044_v25 }
 0x180   : > { %2084 = vrot.lane.b32.xlu1 %v2659_v42, %s2322_s26  ;;  %2079 = vrot.lane.b32.xlu0 %v2597_v19, %s2323_s28 }
 0x182   : > { %v2771_v55 = vpop.eup %2217 }
 0x183   : > { %v705_v51 = vmul.f32 %v2771_v55, %v704_v12 }
 0x184   : > { %2094 = vrot.lane.b32.xlu1 %v2621_v37, %s2322_s26  ;;  %2089 = vrot.lane.b32.xlu0 %v2659_v42, %s2323_s28 }
 0x188   : > { %2099 = vrot.lane.b32.xlu0 %v2621_v37, %s2323_s28  ;;  %v2743_v37 = vld [vmem:[#allocation2 + $0x18] sm:$0xff] }
 0x18c   : > { %2104 = vrot.lane.b32.xlu0 %v2048_v4, %s2322_s26 }
 0x190   : > { %2109 = vrot.lane.b32.xlu0 %v2048_v4, %s2323_s28 }
 0x194   : > { %2119 = vrot.lane.b32.xlu0 %v2693_v63, %s2323_s28 }
 0x198   : > { %2129 = vrot.lane.b32.xlu0 %v2058_v7, %s2323_s28 }
 0x19c   : > { %2139 = vrot.lane.b32.xlu0 %v2706_v41, %s2323_s28 }
 0x1a0   : > { %2149 = vrot.lane.b32.xlu0 %v2068_v15, %s2323_s28 }
 0x1a3   : > { %v971_v46 = vpop.xlane.xlu0 %970 }
 0x1a4   : > { %v2736_v19 = vmax.f32 %v2733_v13, %v971_v46 }
 0x1a6   : > { %v973_v28 = vsub.f32 %v2733_v13, %v2736_v19  ;;  %1119 = vst.msk [vmem:[#allocation2 + $0x10] sm:$0xff] %vm316_vm0, %v2736_v19  ;;  %978 = vperm.xlu1 %2046, %v2736_v19  }
 0x1a8   : > { %v1236_v17 = vpop.xlane.xlu0 %1235 }
 0x1a9   : > { %v2746_v20 = vmax.f32 %v2743_v37, %v1236_v17 }
 0x1ab   : > { %v1238_v23 = vsub.f32 %v2743_v37, %v2746_v20  ;;  %1384 = vst.msk [vmem:[#allocation2 + $0x18] sm:$0xff] %vm316_vm0, %v2746_v20  ;;  %1243 = vperm.xlu1 %2046, %v2746_v20  }
 0x1ac   : > { %v2038_v1 = vpop.permute.xlu0 %2037 }
 0x1ad   : > { %v2040_v45 = vunpack.i.h.bf16 %v2038_v1  ;;  %v2039_v26 = vunpack.i.l.bf16 %v2038_v1 }
 0x1af   : > { %2114 = vrot.lane.b32.xlu1 %v2693_v63, %s2322_s26  ;;  %v1854_v27 = vpack.c.bf16 %v2040_v45, %v2039_v26 }
 0x1b1   : > { %1855 = vmatpush3.bf16.msra.mxu1 %v1854_v27 }
 0x1b2   : > { %1856 = vmatprep.subr.bf16.mxu1 %v2320_v6 }
 0x1b3   : > { %2124 = vrot.lane.b32.xlu1 %v2058_v7, %s2322_s26 }
 0x1b5   : > { %1858 = vmatpush3.bf16.msra.mxu1 %v1857_v32 }
 0x1b6   : > { %1859 = vmatprep.subr.bf16.mxu1 %v2320_v6 }
 0x1b7   : > { %2134 = vrot.lane.b32.xlu1 %v2706_v41, %s2322_s26  ;;  %v1239_v41 = vmul.f32 1.442695, %v1238_v23 }
 0x1bb   : > { %2144 = vrot.lane.b32.xlu1 %v2068_v15, %s2322_s26 }
 0x1bf   : > { %714 = vperm.xlu1 %2046, %v2771_v55  }
 0x1eb   : > { %v481_v36 = vpop.permute.xlu1 %480 }
 0x1ec   : > { %v483_v61 = vsub.f32 %v2550_v33, %v481_v36 }
 0x1ee   : > { %v484_v52 = vmul.f32 1.442695, %v483_v61 }
 0x1ef   : > { %v2050_v39 = vpop.permute.xlu1 %2049 }
 0x1f0   : > { %2219 = vpow2.f32 %v484_v52  ;;  %v2052_v42 = vunpack.i.h.bf16 %v2050_v39  ;;  %v2051_v43 = vunpack.i.l.bf16 %v2050_v39 }
 0x1f2   : > { %v1860_v10 = vpack.c.bf16 %v2052_v42, %v2051_v43 }
 0x1f3   : > { %v2055_v44 = vpop.permute.xlu1 %2054  ;;  %v698_v48 = vpop.permute.xlu0 %697 }
 0x1f4   : > { %v2057_v49 = vunpack.i.h.bf16 %v2055_v44  ;;  %v2056_v9 = vunpack.i.l.bf16 %v2055_v44  ;;  %v700_v50 = vsub.f32 %v2563_v56, %v698_v48  ;;  %1861 = vmatpush3.bf16.msra.mxu1 %v1860_v10 }
 0x1f5   : > { %1862 = vmatprep.subr.bf16.mxu1 %v2320_v6 }
 0x1f6   : > { %v1863_v35 = vpack.c.bf16 %v2057_v49, %v2056_v9  ;;  %v701_v47 = vmul.f32 1.442695, %v700_v50 }
 0x1f7   : > { %v2060_v53 = vpop.permute.xlu0 %2059  ;;  %v2065_v4 = vpop.permute.xlu1 %2064 }
 0x1f8   : > { %2221 = vpow2.f32 %v701_v47  ;;  %v2062_v33 = vunpack.i.h.bf16 %v2060_v53  ;;  %v2061_v57 = vunpack.i.l.bf16 %v2060_v53  ;;  %1864 = vmatpush3.bf16.msra.mxu1 %v1863_v35  ;;  %v2067_v59 = vunpack.i.h.bf16 %v2065_v4 }
 0x1f9   : > { %v2066_v60 = vunpack.i.l.bf16 %v2065_v4  ;;  %1865 = vmatprep.subr.bf16.mxu1 %v2320_v6  ;;  %2223 = vpow2.f32 %v1239_v41 }
 0x1fa   : > { %v2220_v62 = vpop.eup %2219  ;;  %v1866_v63 = vpack.c.bf16 %v2062_v33, %v2061_v57 }
 0x1fb   : > { %1719 = vmatmul.mubr.f32.vlgmr.msra.gmra.mrb[0].mxu0 %v2220_v62  ;;  %v1869_v0 = vpack.c.bf16 %v2067_v59, %v2066_v60  ;;  %488 = vadd.xlane.f32.xlu1 %v2220_v62  ;;  %v2070_v56 = vpop.permute.xlu0 %2069  ;;  %v2075_v2 = vpop.permute.xlu1 %2074 }
 0x1fc   : > { %1867 = vmatpush3.bf16.msra.mxu1 %v1866_v63  ;;  %v2072_v3 = vunpack.i.h.bf16 %v2070_v56  ;;  %v2071_v11 = vunpack.i.l.bf16 %v2070_v56  ;;  %v2077_v5 = vunpack.i.h.bf16 %v2075_v2  ;;  %v2076_v7 = vunpack.i.l.bf16 %v2075_v2  ;;  %1788 = vmatprep.mubr.msk.f32.mxu0 %vm2321_vm2, %v2318_v34 }
 0x1fd   : > { %1868 = vmatprep.subr.bf16.mxu1 %v2320_v6 }
 0x1fe   : > { %v1875_v8 = vpack.c.bf16 %v2077_v5, %v2076_v7  ;;  %v1872_v21 = vpack.c.bf16 %v2072_v3, %v2071_v11 }
 0x1ff   : > { %v2085_v18 = vpop.permute.xlu1 %2084  ;;  %v2080_v40 = vpop.permute.xlu0 %2079 }
 0x200   : > { %1870 = vmatpush3.bf16.msra.mxu1 %v1869_v0  ;;  %v2087_v14 = vunpack.i.h.bf16 %v2085_v18  ;;  %v2086_v58 = vunpack.i.l.bf16 %v2085_v18  ;;  %1876 = vmatpush3.bf16.msra.mxu0 %v1875_v8  ;;  %v2082_v15 = vunpack.i.h.bf16 %v2080_v40  ;;  %v2081_v16 = vunpack.i.l.bf16 %v2080_v40 }
 0x201   : > { %1871 = vmatprep.subr.bf16.mxu1 %v2320_v6  ;;  %1877 = vmatprep.subr.bf16.mxu0 %v2320_v6 }
 0x202   : > { %v2222_v46 = vpop.eup %2221  ;;  %v1878_v37 = vpack.c.bf16 %v2087_v14, %v2086_v58  ;;  %v1899_v17 = vpack.c.bf16 %v2082_v15, %v2081_v16 }
 0x203   : > { %706 = vadd.xlane.f32.xlu0 %v2222_v46  ;;  %v2095_v20 = vpop.permute.xlu1 %2094  ;;  %v2090_v23 = vpop.permute.xlu0 %2089 }
 0x204   : > { %1873 = vmatpush3.bf16.msra.mxu1 %v1872_v21  ;;  %v2097_v24 = vunpack.i.h.bf16 %v2095_v20  ;;  %v2096_v31 = vunpack.i.l.bf16 %v2095_v20  ;;  %1879 = vmatpush3.bf16.msra.mxu0 %v1878_v37  ;;  %v2092_v1 = vunpack.i.h.bf16 %v2090_v23  ;;  %v2091_v22 = vunpack.i.l.bf16 %v2090_v23  ;;  %v2792_v32 = vpop.eup %2223 }
 0x205   : > { %1880 = vmatprep.subr.bf16.mxu0 %v2320_v6  ;;  %1898 = vmatprep.subr.bf16.mxu1 %v2320_v6 }
 0x206   : > { %v1881_v25 = vpack.c.bf16 %v2097_v24, %v2096_v31  ;;  %v1902_v26 = vpack.c.bf16 %v2092_v1, %v2091_v22  ;;  %v476_v22 = vmul.f32 1.442695, %v475_v54 }
 0x207   : > { %1754 = vmatmul.mubr.f32.vlgmr.msra.gmra.mrb[0].mxu1 %v2222_v46  ;;  %v2100_v45 = vpop.permute.xlu0 %2099 }
 0x208   : > { %1882 = vmatpush3.bf16.msra.mxu0 %v1881_v25  ;;  %v2102_v27 = vunpack.i.h.bf16 %v2100_v45  ;;  %v2101_v29 = vunpack.i.l.bf16 %v2100_v45  ;;  %1900 = vmatpush3.bf16.msra.mxu1 %v1899_v17  ;;  %v974_v25 = vmul.f32 1.442695, %v973_v28 }
 0x209   : > { %1901 = vmatprep.subr.bf16.mxu1 %v2320_v6  ;;  %1883 = vmatprep.subr.bf16.mxu0 %v2320_v6 }
 0x20a   : > { %1823 = vmatprep.mubr.msk.f32.mxu1 %vm2321_vm2, %v2318_v34  ;;  %v1905_v61 = vpack.c.bf16 %v2102_v27, %v2101_v29  ;;  %v486_v29 = vld [vmem:[#allocation3] sm:$0xff] }
 0x20b   : > { %v2105_v36 = vpop.permute.xlu0 %2104 }
 0x20c   : > { %1260 = vperm.xlu1 %2046, %v2792_v32   ;;  %v2107_v52 = vunpack.i.h.bf16 %v2105_v36  ;;  %v2106_v39 = vunpack.i.l.bf16 %v2105_v36  ;;  %1903 = vmatpush3.bf16.msra.mxu1 %v1902_v26 }
 0x20d   : > { %1904 = vmatprep.subr.bf16.mxu1 %v2320_v6 }
 0x20e   : > { %v1884_v42 = vpack.c.bf16 %v2107_v52, %v2106_v39 }
 0x20f   : > { %v2110_v43 = vpop.permute.xlu0 %2109 }
 0x210   : > { %v2112_v10 = vunpack.i.h.bf16 %v2110_v43  ;;  %v2111_v44 = vunpack.i.l.bf16 %v2110_v43  ;;  %1906 = vmatpush3.bf16.msra.mxu1 %v1905_v61  ;;  %1885 = vmatpush3.bf16.msra.mxu0 %v1884_v42  ;;  %v985_v42 = vld [vmem:[#allocation3 + $0x10] sm:$0xff] }
 0x211   : > { %1907 = vmatprep.subr.bf16.mxu1 %v2320_v6  ;;  %1886 = vmatprep.subr.bf16.mxu0 %v2320_v6 }
 0x212   : > { %v1908_v34 = vpack.c.bf16 %v2112_v10, %v2111_v44 }
 0x213   : > { %v2120_v48 = vpop.permute.xlu0 %2119 }
 0x214   : > { %v2122_v49 = vunpack.i.h.bf16 %v2120_v48  ;;  %v2121_v9 = vunpack.i.l.bf16 %v2120_v48  ;;  %1909 = vmatpush3.bf16.msra.mxu1 %v1908_v34  ;;  %v1250_v34 = vld [vmem:[#allocation3 + $0x18] sm:$0xff] }
 0x215   : > { %1910 = vmatprep.subr.bf16.mxu1 %v2320_v6  ;;  %v1251_v55 = vmul.f32 %v2792_v32, %v1250_v34 }
 0x216   : > { %v1911_v50 = vpack.c.bf16 %v2122_v49, %v2121_v9 }
 0x217   : > { %v2130_v35 = vpop.permute.xlu0 %2129 }
 0x218   : > { %v2132_v47 = vunpack.i.h.bf16 %v2130_v35  ;;  %v2131_v53 = vunpack.i.l.bf16 %v2130_v35  ;;  %1912 = vmatpush3.bf16.msra.mxu1 %v1911_v50  ;;  %v493_v50 = vld [vmem:[#allocation4] sm:$0xff] }
 0x219   : > { %1913 = vmatprep.subr.bf16.mxu1 %v2320_v6 }
 0x21a   : > { %v1914_v4 = vpack.c.bf16 %v2132_v47, %v2131_v53 }
 0x21b   : > { %v2140_v33 = vpop.permute.xlu0 %2139 }
 0x21c   : > { %v2142_v57 = vunpack.i.h.bf16 %v2140_v33  ;;  %v2141_v59 = vunpack.i.l.bf16 %v2140_v33  ;;  %1915 = vmatpush3.bf16.msra.mxu1 %v1914_v4 }
 0x21d   : > { %1916 = vmatprep.subr.bf16.mxu1 %v2320_v6 }
 0x21e   : > { %v1917_v60 = vpack.c.bf16 %v2142_v57, %v2141_v59  ;;  %v711_v59 = vld [vmem:[#allocation4 + $0x8] sm:$0xff] }
 0x21f   : > { %v2150_v62 = vpop.permute.xlu0 %2149 }
 0x220   : > { %v2152_v63 = vunpack.i.h.bf16 %v2150_v62  ;;  %v2151_v0 = vunpack.i.l.bf16 %v2150_v62  ;;  %1918 = vmatpush3.bf16.msra.mxu1 %v1917_v60 }
 0x221   : > { %1919 = vmatprep.subr.bf16.mxu1 %v2320_v6 }
 0x222   : > { %v1920_v56 = vpack.c.bf16 %v2152_v63, %v2151_v0 }
 0x224   : > { %1921 = vmatpush3.bf16.msra.mxu1 %v1920_v56 }
 0x225   : > { %v979_v2 = vpop.permute.xlu1 %978 }
 0x226   : > { %v981_v3 = vsub.f32 %v2648_v30, %v979_v2  ;;  %v1257_v2 = vld [vmem:[#allocation4 + $0x18] sm:$0xff] }
 0x228   : > { %v982_v11 = vmul.f32 1.442695, %v981_v3 }
 0x22a   : > { %2225 = vpow2.f32 %v982_v11  ;;  %v1244_v5 = vpop.permute.xlu1 %1243 }
 0x22b   : > { %v1246_v7 = vsub.f32 %v2654_v38, %v1244_v5 }
 0x22d   : > { %v1247_v41 = vmul.f32 1.442695, %v1246_v7 }
 0x22e   : > { %v2115_v8 = vpop.permute.xlu1 %2114 }
 0x22f   : > { %2227 = vpow2.f32 %v1247_v41  ;;  %v2117_v21 = vunpack.i.h.bf16 %v2115_v8  ;;  %v2116_v18 = vunpack.i.l.bf16 %v2115_v8  ;;  %v992_v8 = vld [vmem:[#allocation4 + $0x10] sm:$0xff] }
 0x230   : > { %2229 = vpow2.f32 %v476_v22 }
 0x231   : > { %v1887_v40 = vpack.c.bf16 %v2117_v21, %v2116_v18  ;;  %2231 = vpow2.f32 %v974_v25 }
 0x232   : > { %v2125_v14 = vpop.permute.xlu1 %2124 }
 0x233   : > { %v2127_v58 = vunpack.i.h.bf16 %v2125_v14  ;;  %v2126_v15 = vunpack.i.l.bf16 %v2125_v14  ;;  %1888 = vmatpush3.bf16.msra.mxu0 %v1887_v40 }
 0x234   : > { %v2226_v16 = vpop.eup %2225  ;;  %1889 = vmatprep.subr.bf16.mxu0 %v2320_v6 }
 0x235   : > { %v1890_v46 = vpack.c.bf16 %v2127_v58, %v2126_v15  ;;  %987 = vadd.xlane.f32.xlu0 %v2226_v16 }
 0x236   : > { %v2135_v30 = vpop.permute.xlu1 %2134 }
 0x237   : > { %v2137_v37 = vunpack.i.h.bf16 %v2135_v30  ;;  %v2136_v17 = vunpack.i.l.bf16 %v2135_v30  ;;  %1891 = vmatpush3.bf16.msra.mxu0 %v1890_v46 }
 0x238   : > { %1892 = vmatprep.subr.bf16.mxu0 %v2320_v6 }
 0x239   : > { %v2228_v38 = vpop.eup %2227  ;;  %v1893_v20 = vpack.c.bf16 %v2137_v37, %v2136_v17 }
 0x23a   : > { %v2145_v23 = vpop.permute.xlu1 %2144  ;;  %1252 = vadd.xlane.f32.xlu0 %v2228_v38  ;;  %1824 = vmatmul.mubr.f32.vlgmr.msra.gmra.mrb[2].mxu1 %v2228_v38  ;;  %v2230_v45 = vpop.eup %2229 }
 0x23b   : > { %v2147_v24 = vunpack.i.h.bf16 %v2145_v23  ;;  %v2146_v31 = vunpack.i.l.bf16 %v2145_v23  ;;  %1894 = vmatpush3.bf16.msra.mxu0 %v1893_v20  ;;  %v2232_v26 = vpop.eup %2231 }
 0x23c   : > { %1895 = vmatprep.subr.bf16.mxu0 %v2320_v6  ;;  %v487_v6 = vmul.f32 %v2230_v45, %v486_v29  ;;  %v986_v43 = vmul.f32 %v2232_v26, %v985_v42 }
 0x23d   : > { %v1896_v1 = vpack.c.bf16 %v2147_v24, %v2146_v31 }
 0x23e   : > { %v715_v27 = vpop.permute.xlu1 %714 }
 0x23f   : > { %1897 = vmatpush3.bf16.msra.mxu0 %v1896_v1  ;;  %v717_v32 = vmul.f32 %v715_v27, %v711_v59 }
 0x242   : > { %1789 = vmatmul.mubr.f32.vlgmr.msra.gmra.mrb[2].mxu0 %v2226_v16 }
 0x250   : > { %496 = vperm.xlu0 %2047, %v2230_v45  }
 0x254   : > { %995 = vperm.xlu0 %2047, %v2232_v26  }
 0x288   : > { %v489_v36 = vpop.xlane.xlu1 %488 }
 0x289   : > { %v490_v61 = vadd.f32 %v489_v36, %v487_v6 }
 0x28b   : > { %492 = vst.msk [vmem:[#allocation3] sm:$0xff] %vm316_vm0, %v490_v61 }
 0x28c   : > { %v1261_v3 = vpop.permute.xlu1 %1260 }
 0x28d   : > { %v1263_v11 = vmul.f32 %v1261_v3, %v1257_v2 }
 0x290   : > { %v707_v54 = vpop.xlane.xlu0 %706 }
 0x291   : > { %v708_v52 = vadd.f32 %v707_v54, %v705_v51 }
 0x292   : > { %v1389_v39 = vld [vmem:[#allocation3] sm:$0xff] }
 0x293   : > { %709 = vst.msk [vmem:[#allocation3 + $0x8] sm:$0xff] %vm316_vm0, %v708_v52  ;;  %2233 = vrcp.f32 %v1389_v39 }
 0x29a   : > { %v1399_v13 = vld [vmem:[#allocation3 + $0x8] sm:$0xff] }
 0x29b   : > { %2235 = vrcp.f32 %v1399_v13 }
 0x29d   : > { %v2234_v19 = vpop.eup %2233 }
 0x29e   : > { %1394 = vperm.xlu1 %2046, %v2234_v19  }
 0x2a5   : > { %v2236_v28 = vpop.eup %2235 }
 0x2a6   : > { %1404 = vperm.xlu1 %2046, %v2236_v28  }
 0x2c2   : > { %v988_v10 = vpop.xlane.xlu0 %987 }
 0x2c3   : > { %v989_v44 = vadd.f32 %v988_v10, %v986_v43 }
 0x2c5   : > { %990 = vst.msk [vmem:[#allocation3 + $0x10] sm:$0xff] %vm316_vm0, %v989_v44 }
 0x2c7   : > { %v1253_v48 = vpop.xlane.xlu0 %1252 }
 0x2c8   : > { %v1254_v49 = vadd.f32 %v1253_v48, %v1251_v55 }
 0x2ca   : > { %1255 = vst.msk [vmem:[#allocation3 + $0x18] sm:$0xff] %vm316_vm0, %v1254_v49 }
 0x2cc   : > { %v1409_v9 = vld [vmem:[#allocation3 + $0x10] sm:$0xff] }
 0x2cd   : > { %2237 = vrcp.f32 %v1409_v9 }
 0x2ce   : > { %v566_v35 = vpop.f32.mrb[0].mxu0 }
 0x2cf   : > { %v1720_v47 = vpop.f32.mrb[1].mxu0  ;;  %v497_v53 = vpop.permute.xlu0 %496 }
 0x2d0   : > { %v499_v4 = vmul.f32 %v497_v53, %v493_v50 }
 0x2d1   : > { %v1419_v33 = vld [vmem:[#allocation3 + $0x18] sm:$0xff] }
 0x2d2   : > { %v570_v57 = vadd.f32 %v566_v35, %v499_v4  ;;  %2239 = vrcp.f32 %v1419_v33 }
 0x2d3   : > { %v996_v21 = vpop.permute.xlu0 %995 }
 0x2d4   : > { %572 = vst.msk [vmem:[#allocation4] sm:$0xff] %vm325_vm3, %v570_v57  ;;  %v998_v18 = vmul.f32 %v996_v21, %v992_v8 }
 0x2d7   : > { %v2238_v60 = vpop.eup %2237 }
 0x2d8   : > { %1414 = vperm.xlu1 %2046, %v2238_v60  }
 0x2da   : > { %v848_v62 = vpop.f32.mrb[0].mxu1 }
 0x2db   : > { %v852_v63 = vadd.f32 %v848_v62, %v717_v32  ;;  %v1755_v0 = vpop.f32.mrb[1].mxu1  ;;  %v1388_v31 = vld [vmem:[#allocation4] sm:$0xff] }
 0x2dc   : > { %v2240_v56 = vpop.eup %2239 }
 0x2dd   : > { %853 = vst.msk [vmem:[#allocation4 + $0x8] sm:$0xff] %vm325_vm3, %v852_v63  ;;  %1424 = vperm.xlu0 %2047, %v2240_v56  }
 0x2e4   : > { %v1398_v46 = vld [vmem:[#allocation4 + $0x8] sm:$0xff] }
 0x30d   : > { %v1378_v5 = vpop.f32.mrb[2].mxu1 }
 0x30e   : > { %v1382_v7 = vadd.f32 %v1378_v5, %v1263_v11  ;;  %v1825_v41 = vpop.f32.mrb[3].mxu1 }
 0x310   : > { %1383 = vst.msk [vmem:[#allocation4 + $0x18] sm:$0xff] %vm325_vm3, %v1382_v7 }
 0x315   : > { %v1113_v40 = vpop.f32.mrb[2].mxu0 }
 0x316   : > { %v1117_v14 = vadd.f32 %v1113_v40, %v998_v18  ;;  %v1790_v58 = vpop.f32.mrb[3].mxu0 }
 0x317   : > { %v1418_v23 = vld [vmem:[#allocation4 + $0x18] sm:$0xff] }
 0x318   : > { %1118 = vst.msk [vmem:[#allocation4 + $0x10] sm:$0xff] %vm325_vm3, %v1117_v14 }
 0x31d   : > { %v1395_v15 = vpop.permute.xlu1 %1394 }
 0x31e   : > { %v1397_v22 = vmul.f32 %v1395_v15, %v1388_v31 }
 0x31f   : > { %v1408_v17 = vld [vmem:[#allocation4 + $0x10] sm:$0xff] }
 0x325   : > { %v1405_v16 = vpop.permute.xlu1 %1404 }
 0x326   : > { %v1407_v30 = vmul.f32 %v1405_v16, %v1398_v46 }
 0x328   : > { %1429 = vrot.lane.b32.xlu1 %v1407_v30, %s2324_s29 }
 0x357   : > { %v1415_v37 = vpop.permute.xlu1 %1414 }
 0x358   : > { %v1417_v38 = vmul.f32 %v1415_v37, %v1408_v17 }
 0x35a   : > { %1433 = vrot.lane.b32.xlu0 %v1417_v38, %s2325_s30 }
 0x35c   : > { %v1425_v20 = vpop.permute.xlu0 %1424 }
 0x35d   : > { %v1427_v24 = vmul.f32 %v1425_v20, %v1418_v23 }
 0x35f   : > { %1437 = vrot.lane.b32.xlu1 %v1427_v24, %s2326_s5 }
 0x39a   : > { %v1430_v1 = vpop.permute.xlu1 %1429 }
 0x39b   : > { %v1440_v45 = vsel %vm325_vm3, %v1397_v22, %v1430_v1 }
 0x3cc   : > { %v1434_v25 = vpop.permute.xlu0 %1433 }
 0x3cd   : > { %v1442_v26 = vsel %vm1441_vm4, %v1440_v45, %v1434_v25 }
 0x3d1   : > { %v1438_v27 = vpop.permute.xlu1 %1437 }
 0x3d2   : > { %v1444_v29 = vsel %vm1443_vm5, %v1442_v26, %v1438_v27 }
 0x3d3   : > { %1446 = vst.msk [vmem:[%s311_s8] sm:$0xff] %vm1445_vm6, %v1444_v29 }
 0x3d4 PF: > { %s15_s17 = sadd.s32 1, %s2282_s17   ;;  %s2845_s15 = smov %s2278_s16 }
 0x3d5   : > { %p12_p2 = scmp.ge.s32.totalorder %s15_s17, 4   ;;  %s2846_s16 = smov %s2848_s19 }
 0x3d7   :  { %14 = sbr.rel (!%p12_p2) target bundleno = 2 (0x2), region = 94 }
 0x3de   :  { %1472 = vsyncpa [#allocation6], 1 }
 0x3df   :  { %1474 = vsyncpa [#allocation6 + $0x1], 1 }

</bundles_post_ra>
